<compile_context>
chip_gen: v6e
topology: v6e:2x2x1
jax: 0.10.0
libtpu: 0.0.40
codegen_flags: <defaults>
</compile_context>

<pallas_src>
import numpy as np
import jax
import jax.numpy as jnp
from jax.experimental import pallas as pl
from jax.experimental.pallas import tpu as pltpu

_LN_EPS = 1e-5
_INV_SQRT2 = 0.7071067811865476

_VMEM = pl.BlockSpec(memory_space=pltpu.MemorySpace.VMEM)


# ------------------------- in-kernel math helpers -------------------------
def _layernorm(z, gamma, beta):
    # f32 math, biased variance, eps=1e-5 (torch defaults)
    mean = jnp.mean(z, axis=-1, keepdims=True)
    var = jnp.mean(jnp.square(z - mean), axis=-1, keepdims=True)
    return (z - mean) * jax.lax.rsqrt(var + _LN_EPS) * gamma + beta


def _gelu(z):
    # exact (erf) GELU == torch.nn.GELU() / F.gelu default
    return 0.5 * z * (1.0 + jax.lax.erf(z * _INV_SQRT2))


def _mm(a, w):
    # bf16 x bf16 on the MXU, f32 accumulation; identity cast if w is f32.
    return jnp.dot(a.astype(w.dtype), w, preferred_element_type=jnp.float32)


# ------------------------------ fused kernel -------------------------------
def _fused_forward_kernel(
        x_ref,
        ip_w1_ref, ip_b1_ref, ip_g1_ref, ip_be1_ref,
        ip_w2_ref, ip_b2_ref, ip_g2_ref, ip_be2_ref,
        enc_wa_ref, enc_w1_ref, enc_w2_ref, enc_vec_ref,
        pool_w_ref, pool_b_ref,
        c1_w_ref, c1_b_ref, c1_g_ref, c1_be_ref,
        c2_w_ref, c2_b_ref, c2_g_ref, c2_be_ref,
        c3_w_ref, c3_b_ref,
        o_ref):
    """Whole UltraAdvancedTransformer forward in one kernel invocation.

    seq_len == 1 (x.unsqueeze(1) in the PyTorch model): softmax over a single
    key position is exactly 1 for every head, so self_attn(x) reduces exactly
    to x @ (Wv @ Wo) + (bv @ Wo + bo); those folds are done offline in f32.
    """
    L = enc_wa_ref.shape[0]
    E = enc_wa_ref.shape[1]
    F = enc_w1_ref.shape[2]

    # ---- input_projection: Linear -> LN -> GELU -> (Dropout) -> Linear -> LN
    h = _mm(x_ref[...], ip_w1_ref[...]) + ip_b1_ref[...]
    h = _gelu(_layernorm(h, ip_g1_ref[...], ip_be1_ref[...]))
    h = _mm(h, ip_w2_ref[...]) + ip_b2_ref[...]
    h = _layernorm(h, ip_g2_ref[...], ip_be2_ref[...])

    # ---- transformer encoder stack (post-norm, gelu FFN), weights resident
    for l in range(L):                      # L is small & static -> unrolled
        vec = enc_vec_ref[l]                # (8, max(E,F)) coalesced vectors
        b_attn = vec[0:1, :E]
        ln1_g = vec[1:2, :E]
        ln1_b = vec[2:3, :E]
        ff_b1 = vec[3:4, :F]
        ff_b2 = vec[4:5, :E]
        ln2_g = vec[5:6, :E]
        ln2_b = vec[6:7, :E]

        # self-attention sublayer (folded) + residual + LN1
        attn = _mm(h, enc_wa_ref[l]) + b_attn
        h = _layernorm(h + attn, ln1_g, ln1_b)

        # feed-forward sublayer + residual + LN2
        ff = _gelu(_mm(h, enc_w1_ref[l]) + ff_b1)
        ff = _mm(ff, enc_w2_ref[l]) + ff_b2
        h = _layernorm(h + ff, ln2_g, ln2_b)

    # ---- attention pooling (folded Wv@Wo) + squeeze(1) + classifier head
    pooled = _mm(h, pool_w_ref[...]) + pool_b_ref[...]
    c = _gelu(_layernorm(_mm(pooled, c1_w_ref[...]) + c1_b_ref[...],
                         c1_g_ref[...], c1_be_ref[...]))
    c = _gelu(_layernorm(_mm(c, c2_w_ref[...]) + c2_b_ref[...],
                         c2_g_ref[...], c2_be_ref[...]))
    o_ref[...] = _mm(c, c3_w_ref[...]) + c3_b_ref[...]


# ------------------------------ pallas_call glue ---------------------------
def forward(p, x):
    args = (
        x,
        p['ip_w1'], p['ip_b1'], p['ip_g1'], p['ip_be1'],
        p['ip_w2'], p['ip_b2'], p['ip_g2'], p['ip_be2'],
        p['enc_w_attn'], p['enc_ff_w1'], p['enc_ff_w2'], p['enc_vec'],
        p['pool_w'], p['pool_b'],
        p['cl_w1'], p['cl_b1'], p['cl_g1'], p['cl_be1'],
        p['cl_w2'], p['cl_b2'], p['cl_g2'], p['cl_be2'],
        p['cl_w3'], p['cl_b3'],
    )
    B = x.shape[0]
    C = p['cl_w3'].shape[1]
    return pl.pallas_call(
        _fused_forward_kernel,
        out_shape=jax.ShapeDtypeStruct((B, C), jnp.float32),
        in_specs=[_VMEM] * len(args),
        out_specs=_VMEM,
    )(*args)
    # TODO(synk): if batch grows >=16 rows/core, add a leading "parallel"
    # batch grid axis so v7x megacore splits the batch across its 2 TCs.


# ------------------------------ parameters ---------------------------------
def init_params(key, input_dim, embed_dim, n_layers, ff_dim, num_classes):
    """Raw parameters mirroring the PyTorch module (f32, torch init scheme)."""
    E, F = embed_dim, ff_dim
    keys = iter(jax.random.split(key, 256))

    def xavier(din, dout):
        limit = float(np.sqrt(6.0 / (din + dout)))
        return jax.random.uniform(next(keys), (din, dout), jnp.float32, -limit, limit)

    def lin(din, dout):
        return xavier(din, dout), jnp.zeros((1, dout), jnp.float32)

    def lnp(d):
        return jnp.ones((1, d), jnp.float32), jnp.zeros((1, d), jnp.float32)

    p = {}
    # input_projection
    p['ip_w1'], p['ip_b1'] = lin(input_dim, E // 2)
    p['ip_g1'], p['ip_be1'] = lnp(E // 2)
    p['ip_w2'], p['ip_b2'] = lin(E // 2, E)
    p['ip_g2'], p['ip_be2'] = lnp(E)

    # encoder layers. wq/wk/bq/bk are mathematically dead at seq_len==1
    # (softmax over a single key == 1) and are never allocated or DMA'd.
    layers = []
    for _ in range(n_layers):
        layers.append({
            'wv': xavier(E, E), 'bv': jnp.zeros((1, E), jnp.float32),
            'wo': xavier(E, E), 'bo': jnp.zeros((1, E), jnp.float32),
            'ln1_g': jnp.ones((1, E), jnp.float32), 'ln1_b': jnp.zeros((1, E), jnp.float32),
            'ff_w1': xavier(E, F), 'ff_b1': jnp.zeros((1, F), jnp.float32),
            'ff_w2': xavier(F, E), 'ff_b2': jnp.zeros((1, E), jnp.float32),
            'ln2_g': jnp.ones((1, E), jnp.float32), 'ln2_b': jnp.zeros((1, E), jnp.float32),
        })
    p['layers'] = layers

    # attention pooling (q=k=v=x, seq_len==1 -> q/k dead as above)
    p['pool_wv'], p['pool_bv'] = lin(E, E)
    p['pool_wo'], p['pool_bo'] = lin(E, E)

    # classifier head
    p['cl_w1'], p['cl_b1'] = lin(E, E // 2)
    p['cl_g1'], p['cl_be1'] = lnp(E // 2)
    p['cl_w2'], p['cl_b2'] = lin(E // 2, E // 4)
    p['cl_g2'], p['cl_be2'] = lnp(E // 4)
    p['cl_w3'], p['cl_b3'] = lin(E // 4, num_classes)
    return p


def pack_params(raw, weight_dtype=jnp.bfloat16):
    """Offline fold/pack/cast of raw params into fused-kernel inputs.

    - Folds Wv@Wo (and bv@Wo + bo) in f32 for every encoder layer and for the
      pooling block (exact at seq_len==1).
    - Coalesces the 7 per-layer bias/LN vectors into one (L, 8, max(E,F))
      f32 array (one DMA instead of 7 small ones).
    - Casts all matmul weight matrices to bf16 (f32 accumulation in-kernel);
      biases and LayerNorm parameters stay f32.
    """
    layers = raw['layers']
    E = layers[0]['wv'].shape[0]
    F = layers[0]['ff_w1'].shape[1]
    W = max(E, F)

    def cast(w):
        return w.astype(weight_dtype)

    def pad_row(v):
        v = v.reshape(1, -1)
        return jnp.pad(v, ((0, 0), (0, W - v.shape[1])))

    w_attn, ff_w1, ff_w2, vecs = [], [], [], []
    for lyr in layers:
        wa = lyr['wv'] @ lyr['wo']                       # (E, E), f32 fold
        ba = lyr['bv'] @ lyr['wo'] + lyr['bo']           # (1, E)
        w_attn.append(wa)
        ff_w1.append(lyr['ff_w1'])
        ff_w2.append(lyr['ff_w2'])
        vecs.append(jnp.concatenate([
            pad_row(ba), pad_row(lyr['ln1_g']), pad_row(lyr['ln1_b']),
            pad_row(lyr['ff_b1']), pad_row(lyr['ff_b2']),
            pad_row(lyr['ln2_g']), pad_row(lyr['ln2_b']),
            jnp.zeros((1, W), jnp.float32),
        ], axis=0))                                      # (8, W)

    pool_w = raw['pool_wv'] @ raw['pool_wo']
    pool_b = raw['pool_bv'] @ raw['pool_wo'] + raw['pool_bo']

    return {
        'ip_w1': cast(raw['ip_w1']), 'ip_b1': raw['ip_b1'],
        'ip_g1': raw['ip_g1'], 'ip_be1': raw['ip_be1'],
        'ip_w2': cast(raw['ip_w2']), 'ip_b2': raw['ip_b2'],
        'ip_g2': raw['ip_g2'], 'ip_be2': raw['ip_be2'],
        'enc_w_attn': cast(jnp.stack(w_attn, axis=0)),   # (L, E, E) bf16
        'enc_ff_w1': cast(jnp.stack(ff_w1, axis=0)),     # (L, E, F) bf16
        'enc_ff_w2': cast(jnp.stack(ff_w2, axis=0)),     # (L, F, E) bf16
        'enc_vec': jnp.stack(vecs, axis=0),              # (L, 8, W) f32
        'pool_w': cast(pool_w), 'pool_b': pool_b,
        'cl_w1': cast(raw['cl_w1']), 'cl_b1': raw['cl_b1'],
        'cl_g1': raw['cl_g1'], 'cl_be1': raw['cl_be1'],
        'cl_w2': cast(raw['cl_w2']), 'cl_b2': raw['cl_b2'],
        'cl_g2': raw['cl_g2'], 'cl_be2': raw['cl_be2'],
        'cl_w3': cast(raw['cl_w3']), 'cl_b3': raw['cl_b3'],
    }


# ---------------------------------- main ------------------------------------
if __name__ == "__main__":
    # Small, TPU-layout-friendly config (module accepts an arbitrary `config`):
    # batch = 8 (f32 sublane multiple), embed_dim = 128 (lane-dense), ff = 256.
    B = 8
    INPUT_DIM = 116       # TCGA default input feature count
    EMBED_DIM = 128       # divisible by n_heads and the pooling's 8 heads
    N_LAYERS = 4
    FF_DIM = 256
    NUM_CLASSES = 8

    key = jax.random.PRNGKey(0)
    pkey, xkey = jax.random.split(key)
    raw_params = init_params(pkey, INPUT_DIM, EMBED_DIM, N_LAYERS, FF_DIM, NUM_CLASSES)
    params = pack_params(raw_params)
    x = jax.random.normal(xkey, (B, INPUT_DIM), jnp.float32)

    fwd = jax.jit(forward)
    out = jax.block_until_ready(fwd(params, x))

    assert out.shape == (B, NUM_CLASSES)
    assert out.dtype == jnp.float32
    assert bool(jnp.all(jnp.isfinite(out)))
    print("KERNEL_OK")
</pallas_src>

<mosaic_0001>
module attributes {stable_mosaic.version = 11 : i64} {
  func.func @_fused_forward_kernel(%arg0: memref<8x116xf32, #tpu.memory_space<vmem>>, %arg1: memref<116x64xbf16, #tpu.memory_space<vmem>>, %arg2: memref<1x64xf32, #tpu.memory_space<vmem>>, %arg3: memref<1x64xf32, #tpu.memory_space<vmem>>, %arg4: memref<1x64xf32, #tpu.memory_space<vmem>>, %arg5: memref<64x128xbf16, #tpu.memory_space<vmem>>, %arg6: memref<1x128xf32, #tpu.memory_space<vmem>>, %arg7: memref<1x128xf32, #tpu.memory_space<vmem>>, %arg8: memref<1x128xf32, #tpu.memory_space<vmem>>, %arg9: memref<4x128x128xbf16, #tpu.memory_space<vmem>>, %arg10: memref<4x128x256xbf16, #tpu.memory_space<vmem>>, %arg11: memref<4x256x128xbf16, #tpu.memory_space<vmem>>, %arg12: memref<4x8x256xf32, #tpu.memory_space<vmem>>, %arg13: memref<128x128xbf16, #tpu.memory_space<vmem>>, %arg14: memref<1x128xf32, #tpu.memory_space<vmem>>, %arg15: memref<128x64xbf16, #tpu.memory_space<vmem>>, %arg16: memref<1x64xf32, #tpu.memory_space<vmem>>, %arg17: memref<1x64xf32, #tpu.memory_space<vmem>>, %arg18: memref<1x64xf32, #tpu.memory_space<vmem>>, %arg19: memref<64x32xbf16, #tpu.memory_space<vmem>>, %arg20: memref<1x32xf32, #tpu.memory_space<vmem>>, %arg21: memref<1x32xf32, #tpu.memory_space<vmem>>, %arg22: memref<1x32xf32, #tpu.memory_space<vmem>>, %arg23: memref<32x8xbf16, #tpu.memory_space<vmem>>, %arg24: memref<1x8xf32, #tpu.memory_space<vmem>>, %arg25: memref<8x8xf32, #tpu.memory_space<vmem>>) attributes {dimension_semantics = [], scalar_prefetch = 0 : i64, scratch_operands = 0 : i64, tpu.core_type = #tpu.core_type<tc>} {
    %c0 = arith.constant 0 : index
    %c0_0 = arith.constant 0 : index
    %0 = vector.load %arg0[%c0, %c0_0] : memref<8x116xf32, #tpu.memory_space<vmem>>, vector<8x116xf32>
    %c0_1 = arith.constant 0 : index
    %c0_2 = arith.constant 0 : index
    %1 = vector.load %arg1[%c0_1, %c0_2] : memref<116x64xbf16, #tpu.memory_space<vmem>>, vector<116x64xbf16>
    %2 = arith.truncf %0 : vector<8x116xf32> to vector<8x116xbf16>
    %cst = arith.constant dense<0.000000e+00> : vector<8x64xf32>
    %3 = tpu.matmul %2, %1, %cst {dimension_numbers = #tpu.dot_dimension_numbers<[1], [0], [0], [1], [0, 0, 1, 1], [], []>} : vector<8x116xbf16>, vector<116x64xbf16>, vector<8x64xf32> -> vector<8x64xf32>
    %c0_3 = arith.constant 0 : index
    %c0_4 = arith.constant 0 : index
    %4 = vector.load %arg2[%c0_3, %c0_4] : memref<1x64xf32, #tpu.memory_space<vmem>>, vector<1x64xf32>
    %5 = vector.broadcast %4 : vector<1x64xf32> to vector<8x64xf32>
    %6 = arith.addf %3, %5 : vector<8x64xf32>
    %c0_5 = arith.constant 0 : index
    %c0_6 = arith.constant 0 : index
    %7 = vector.load %arg3[%c0_5, %c0_6] : memref<1x64xf32, #tpu.memory_space<vmem>>, vector<1x64xf32>
    %c0_7 = arith.constant 0 : index
    %c0_8 = arith.constant 0 : index
    %8 = vector.load %arg4[%c0_7, %c0_8] : memref<1x64xf32, #tpu.memory_space<vmem>>, vector<1x64xf32>
    %cst_9 = arith.constant dense<0.000000e+00> : vector<8xf32>
    %9 = vector.multi_reduction <add>, %6, %cst_9 [1] : vector<8x64xf32> to vector<8xf32>
    %10 = vector.shape_cast %9 : vector<8xf32> to vector<8x1xf32>
    %cst_10 = arith.constant 6.400000e+01 : f32
    %11 = vector.broadcast %cst_10 : f32 to vector<8x1xf32>
    %12 = arith.divf %10, %11 : vector<8x1xf32>
    %13 = vector.broadcast %12 : vector<8x1xf32> to vector<8x64xf32>
    %14 = arith.subf %6, %13 : vector<8x64xf32>
    %15 = arith.mulf %14, %14 : vector<8x64xf32>
    %cst_11 = arith.constant dense<0.000000e+00> : vector<8xf32>
    %16 = vector.multi_reduction <add>, %15, %cst_11 [1] : vector<8x64xf32> to vector<8xf32>
    %17 = vector.shape_cast %16 : vector<8xf32> to vector<8x1xf32>
    %cst_12 = arith.constant 6.400000e+01 : f32
    %18 = vector.broadcast %cst_12 : f32 to vector<8x1xf32>
    %19 = arith.divf %17, %18 : vector<8x1xf32>
    %20 = vector.broadcast %12 : vector<8x1xf32> to vector<8x64xf32>
    %21 = arith.subf %6, %20 : vector<8x64xf32>
    %cst_13 = arith.constant 9.99999974E-6 : f32
    %22 = vector.broadcast %cst_13 : f32 to vector<8x1xf32>
    %23 = arith.addf %19, %22 : vector<8x1xf32>
    %24 = math.rsqrt %23 : vector<8x1xf32>
    %25 = vector.broadcast %24 : vector<8x1xf32> to vector<8x64xf32>
    %26 = arith.mulf %21, %25 : vector<8x64xf32>
    %27 = vector.broadcast %7 : vector<1x64xf32> to vector<8x64xf32>
    %28 = arith.mulf %26, %27 : vector<8x64xf32>
    %29 = vector.broadcast %8 : vector<1x64xf32> to vector<8x64xf32>
    %30 = arith.addf %28, %29 : vector<8x64xf32>
    %cst_14 = arith.constant 5.000000e-01 : f32
    %31 = vector.broadcast %cst_14 : f32 to vector<8x64xf32>
    %32 = arith.mulf %31, %30 : vector<8x64xf32>
    %cst_15 = arith.constant 0.707106769 : f32
    %33 = vector.broadcast %cst_15 : f32 to vector<8x64xf32>
    %34 = arith.mulf %30, %33 : vector<8x64xf32>
    %35 = math.erf %34 : vector<8x64xf32>
    %cst_16 = arith.constant 1.000000e+00 : f32
    %36 = vector.broadcast %cst_16 : f32 to vector<8x64xf32>
    %37 = arith.addf %36, %35 : vector<8x64xf32>
    %38 = arith.mulf %32, %37 : vector<8x64xf32>
    %c0_17 = arith.constant 0 : index
    %c0_18 = arith.constant 0 : index
    %39 = vector.load %arg5[%c0_17, %c0_18] : memref<64x128xbf16, #tpu.memory_space<vmem>>, vector<64x128xbf16>
    %40 = arith.truncf %38 : vector<8x64xf32> to vector<8x64xbf16>
    %cst_19 = arith.constant dense<0.000000e+00> : vector<8x128xf32>
    %41 = tpu.matmul %40, %39, %cst_19 {dimension_numbers = #tpu.dot_dimension_numbers<[1], [0], [0], [1], [0, 0, 1, 1], [], []>} : vector<8x64xbf16>, vector<64x128xbf16>, vector<8x128xf32> -> vector<8x128xf32>
    %c0_20 = arith.constant 0 : index
    %c0_21 = arith.constant 0 : index
    %42 = vector.load %arg6[%c0_20, %c0_21] : memref<1x128xf32, #tpu.memory_space<vmem>>, vector<1x128xf32>
    %43 = vector.broadcast %42 : vector<1x128xf32> to vector<8x128xf32>
    %44 = arith.addf %41, %43 : vector<8x128xf32>
    %c0_22 = arith.constant 0 : index
    %c0_23 = arith.constant 0 : index
    %45 = vector.load %arg7[%c0_22, %c0_23] : memref<1x128xf32, #tpu.memory_space<vmem>>, vector<1x128xf32>
    %c0_24 = arith.constant 0 : index
    %c0_25 = arith.constant 0 : index
    %46 = vector.load %arg8[%c0_24, %c0_25] : memref<1x128xf32, #tpu.memory_space<vmem>>, vector<1x128xf32>
    %cst_26 = arith.constant dense<0.000000e+00> : vector<8xf32>
    %47 = vector.multi_reduction <add>, %44, %cst_26 [1] : vector<8x128xf32> to vector<8xf32>
    %48 = vector.shape_cast %47 : vector<8xf32> to vector<8x1xf32>
    %cst_27 = arith.constant 1.280000e+02 : f32
    %49 = vector.broadcast %cst_27 : f32 to vector<8x1xf32>
    %50 = arith.divf %48, %49 : vector<8x1xf32>
    %51 = vector.broadcast %50 : vector<8x1xf32> to vector<8x128xf32>
    %52 = arith.subf %44, %51 : vector<8x128xf32>
    %53 = arith.mulf %52, %52 : vector<8x128xf32>
    %cst_28 = arith.constant dense<0.000000e+00> : vector<8xf32>
    %54 = vector.multi_reduction <add>, %53, %cst_28 [1] : vector<8x128xf32> to vector<8xf32>
    %55 = vector.shape_cast %54 : vector<8xf32> to vector<8x1xf32>
    %cst_29 = arith.constant 1.280000e+02 : f32
    %56 = vector.broadcast %cst_29 : f32 to vector<8x1xf32>
    %57 = arith.divf %55, %56 : vector<8x1xf32>
    %58 = vector.broadcast %50 : vector<8x1xf32> to vector<8x128xf32>
    %59 = arith.subf %44, %58 : vector<8x128xf32>
    %cst_30 = arith.constant 9.99999974E-6 : f32
    %60 = vector.broadcast %cst_30 : f32 to vector<8x1xf32>
    %61 = arith.addf %57, %60 : vector<8x1xf32>
    %62 = math.rsqrt %61 : vector<8x1xf32>
    %63 = vector.broadcast %62 : vector<8x1xf32> to vector<8x128xf32>
    %64 = arith.mulf %59, %63 : vector<8x128xf32>
    %65 = vector.broadcast %45 : vector<1x128xf32> to vector<8x128xf32>
    %66 = arith.mulf %64, %65 : vector<8x128xf32>
    %67 = vector.broadcast %46 : vector<1x128xf32> to vector<8x128xf32>
    %68 = arith.addf %66, %67 : vector<8x128xf32>
    %c0_31 = arith.constant 0 : index
    %c0_32 = arith.constant 0 : index
    %c0_33 = arith.constant 0 : index
    %69 = vector.load %arg12[%c0_31, %c0_32, %c0_33] : memref<4x8x256xf32, #tpu.memory_space<vmem>>, vector<1x8x256xf32>
    %70 = vector.shape_cast %69 : vector<1x8x256xf32> to vector<8x256xf32>
    %71 = vector.extract_strided_slice %70 {offsets = [0, 0], sizes = [1, 128], strides = [1, 1]} : vector<8x256xf32> to vector<1x128xf32>
    %72 = vector.extract_strided_slice %70 {offsets = [1, 0], sizes = [1, 128], strides = [1, 1]} : vector<8x256xf32> to vector<1x128xf32>
    %73 = vector.extract_strided_slice %70 {offsets = [2, 0], sizes = [1, 128], strides = [1, 1]} : vector<8x256xf32> to vector<1x128xf32>
    %74 = vector.extract_strided_slice %70 {offsets = [3, 0], sizes = [1, 256], strides = [1, 1]} : vector<8x256xf32> to vector<1x256xf32>
    %75 = vector.extract_strided_slice %70 {offsets = [4, 0], sizes = [1, 128], strides = [1, 1]} : vector<8x256xf32> to vector<1x128xf32>
    %76 = vector.extract_strided_slice %70 {offsets = [5, 0], sizes = [1, 128], strides = [1, 1]} : vector<8x256xf32> to vector<1x128xf32>
    %77 = vector.extract_strided_slice %70 {offsets = [6, 0], sizes = [1, 128], strides = [1, 1]} : vector<8x256xf32> to vector<1x128xf32>
    %c0_34 = arith.constant 0 : index
    %c0_35 = arith.constant 0 : index
    %c0_36 = arith.constant 0 : index
    %78 = vector.load %arg9[%c0_34, %c0_35, %c0_36] : memref<4x128x128xbf16, #tpu.memory_space<vmem>>, vector<1x128x128xbf16>
    %79 = vector.shape_cast %78 : vector<1x128x128xbf16> to vector<128x128xbf16>
    %80 = arith.truncf %68 : vector<8x128xf32> to vector<8x128xbf16>
    %cst_37 = arith.constant dense<0.000000e+00> : vector<8x128xf32>
    %81 = tpu.matmul %80, %79, %cst_37 {dimension_numbers = #tpu.dot_dimension_numbers<[1], [0], [0], [1], [0, 0, 1, 1], [], []>} : vector<8x128xbf16>, vector<128x128xbf16>, vector<8x128xf32> -> vector<8x128xf32>
    %82 = vector.broadcast %71 : vector<1x128xf32> to vector<8x128xf32>
    %83 = arith.addf %81, %82 : vector<8x128xf32>
    %84 = arith.addf %68, %83 : vector<8x128xf32>
    %cst_38 = arith.constant dense<0.000000e+00> : vector<8xf32>
    %85 = vector.multi_reduction <add>, %84, %cst_38 [1] : vector<8x128xf32> to vector<8xf32>
    %86 = vector.shape_cast %85 : vector<8xf32> to vector<8x1xf32>
    %cst_39 = arith.constant 1.280000e+02 : f32
    %87 = vector.broadcast %cst_39 : f32 to vector<8x1xf32>
    %88 = arith.divf %86, %87 : vector<8x1xf32>
    %89 = vector.broadcast %88 : vector<8x1xf32> to vector<8x128xf32>
    %90 = arith.subf %84, %89 : vector<8x128xf32>
    %91 = arith.mulf %90, %90 : vector<8x128xf32>
    %cst_40 = arith.constant dense<0.000000e+00> : vector<8xf32>
    %92 = vector.multi_reduction <add>, %91, %cst_40 [1] : vector<8x128xf32> to vector<8xf32>
    %93 = vector.shape_cast %92 : vector<8xf32> to vector<8x1xf32>
    %cst_41 = arith.constant 1.280000e+02 : f32
    %94 = vector.broadcast %cst_41 : f32 to vector<8x1xf32>
    %95 = arith.divf %93, %94 : vector<8x1xf32>
    %96 = vector.broadcast %88 : vector<8x1xf32> to vector<8x128xf32>
    %97 = arith.subf %84, %96 : vector<8x128xf32>
    %cst_42 = arith.constant 9.99999974E-6 : f32
    %98 = vector.broadcast %cst_42 : f32 to vector<8x1xf32>
    %99 = arith.addf %95, %98 : vector<8x1xf32>
    %100 = math.rsqrt %99 : vector<8x1xf32>
    %101 = vector.broadcast %100 : vector<8x1xf32> to vector<8x128xf32>
    %102 = arith.mulf %97, %101 : vector<8x128xf32>
    %103 = vector.broadcast %72 : vector<1x128xf32> to vector<8x128xf32>
    %104 = arith.mulf %102, %103 : vector<8x128xf32>
    %105 = vector.broadcast %73 : vector<1x128xf32> to vector<8x128xf32>
    %106 = arith.addf %104, %105 : vector<8x128xf32>
    %c0_43 = arith.constant 0 : index
    %c0_44 = arith.constant 0 : index
    %c0_45 = arith.constant 0 : index
    %107 = vector.load %arg10[%c0_43, %c0_44, %c0_45] : memref<4x128x256xbf16, #tpu.memory_space<vmem>>, vector<1x128x256xbf16>
    %108 = vector.shape_cast %107 : vector<1x128x256xbf16> to vector<128x256xbf16>
    %109 = arith.truncf %106 : vector<8x128xf32> to vector<8x128xbf16>
    %cst_46 = arith.constant dense<0.000000e+00> : vector<8x256xf32>
    %110 = tpu.matmul %109, %108, %cst_46 {dimension_numbers = #tpu.dot_dimension_numbers<[1], [0], [0], [1], [0, 0, 1, 1], [], []>} : vector<8x128xbf16>, vector<128x256xbf16>, vector<8x256xf32> -> vector<8x256xf32>
    %111 = vector.broadcast %74 : vector<1x256xf32> to vector<8x256xf32>
    %112 = arith.addf %110, %111 : vector<8x256xf32>
    %cst_47 = arith.constant 5.000000e-01 : f32
    %113 = vector.broadcast %cst_47 : f32 to vector<8x256xf32>
    %114 = arith.mulf %113, %112 : vector<8x256xf32>
    %cst_48 = arith.constant 0.707106769 : f32
    %115 = vector.broadcast %cst_48 : f32 to vector<8x256xf32>
    %116 = arith.mulf %112, %115 : vector<8x256xf32>
    %117 = math.erf %116 : vector<8x256xf32>
    %cst_49 = arith.constant 1.000000e+00 : f32
    %118 = vector.broadcast %cst_49 : f32 to vector<8x256xf32>
    %119 = arith.addf %118, %117 : vector<8x256xf32>
    %120 = arith.mulf %114, %119 : vector<8x256xf32>
    %c0_50 = arith.constant 0 : index
    %c0_51 = arith.constant 0 : index
    %c0_52 = arith.constant 0 : index
    %121 = vector.load %arg11[%c0_50, %c0_51, %c0_52] : memref<4x256x128xbf16, #tpu.memory_space<vmem>>, vector<1x256x128xbf16>
    %122 = vector.shape_cast %121 : vector<1x256x128xbf16> to vector<256x128xbf16>
    %123 = arith.truncf %120 : vector<8x256xf32> to vector<8x256xbf16>
    %cst_53 = arith.constant dense<0.000000e+00> : vector<8x128xf32>
    %124 = tpu.matmul %123, %122, %cst_53 {dimension_numbers = #tpu.dot_dimension_numbers<[1], [0], [0], [1], [0, 0, 1, 1], [], []>} : vector<8x256xbf16>, vector<256x128xbf16>, vector<8x128xf32> -> vector<8x128xf32>
    %125 = vector.broadcast %75 : vector<1x128xf32> to vector<8x128xf32>
    %126 = arith.addf %124, %125 : vector<8x128xf32>
    %127 = arith.addf %106, %126 : vector<8x128xf32>
    %cst_54 = arith.constant dense<0.000000e+00> : vector<8xf32>
    %128 = vector.multi_reduction <add>, %127, %cst_54 [1] : vector<8x128xf32> to vector<8xf32>
    %129 = vector.shape_cast %128 : vector<8xf32> to vector<8x1xf32>
    %cst_55 = arith.constant 1.280000e+02 : f32
    %130 = vector.broadcast %cst_55 : f32 to vector<8x1xf32>
    %131 = arith.divf %129, %130 : vector<8x1xf32>
    %132 = vector.broadcast %131 : vector<8x1xf32> to vector<8x128xf32>
    %133 = arith.subf %127, %132 : vector<8x128xf32>
    %134 = arith.mulf %133, %133 : vector<8x128xf32>
    %cst_56 = arith.constant dense<0.000000e+00> : vector<8xf32>
    %135 = vector.multi_reduction <add>, %134, %cst_56 [1] : vector<8x128xf32> to vector<8xf32>
    %136 = vector.shape_cast %135 : vector<8xf32> to vector<8x1xf32>
    %cst_57 = arith.constant 1.280000e+02 : f32
    %137 = vector.broadcast %cst_57 : f32 to vector<8x1xf32>
    %138 = arith.divf %136, %137 : vector<8x1xf32>
    %139 = vector.broadcast %131 : vector<8x1xf32> to vector<8x128xf32>
    %140 = arith.subf %127, %139 : vector<8x128xf32>
    %cst_58 = arith.constant 9.99999974E-6 : f32
    %141 = vector.broadcast %cst_58 : f32 to vector<8x1xf32>
    %142 = arith.addf %138, %141 : vector<8x1xf32>
    %143 = math.rsqrt %142 : vector<8x1xf32>
    %144 = vector.broadcast %143 : vector<8x1xf32> to vector<8x128xf32>
    %145 = arith.mulf %140, %144 : vector<8x128xf32>
    %146 = vector.broadcast %76 : vector<1x128xf32> to vector<8x128xf32>
    %147 = arith.mulf %145, %146 : vector<8x128xf32>
    %148 = vector.broadcast %77 : vector<1x128xf32> to vector<8x128xf32>
    %149 = arith.addf %147, %148 : vector<8x128xf32>
    %c1 = arith.constant 1 : index
    %c0_59 = arith.constant 0 : index
    %c0_60 = arith.constant 0 : index
    %150 = vector.load %arg12[%c1, %c0_59, %c0_60] : memref<4x8x256xf32, #tpu.memory_space<vmem>>, vector<1x8x256xf32>
    %151 = vector.shape_cast %150 : vector<1x8x256xf32> to vector<8x256xf32>
    %152 = vector.extract_strided_slice %151 {offsets = [0, 0], sizes = [1, 128], strides = [1, 1]} : vector<8x256xf32> to vector<1x128xf32>
    %153 = vector.extract_strided_slice %151 {offsets = [1, 0], sizes = [1, 128], strides = [1, 1]} : vector<8x256xf32> to vector<1x128xf32>
    %154 = vector.extract_strided_slice %151 {offsets = [2, 0], sizes = [1, 128], strides = [1, 1]} : vector<8x256xf32> to vector<1x128xf32>
    %155 = vector.extract_strided_slice %151 {offsets = [3, 0], sizes = [1, 256], strides = [1, 1]} : vector<8x256xf32> to vector<1x256xf32>
    %156 = vector.extract_strided_slice %151 {offsets = [4, 0], sizes = [1, 128], strides = [1, 1]} : vector<8x256xf32> to vector<1x128xf32>
    %157 = vector.extract_strided_slice %151 {offsets = [5, 0], sizes = [1, 128], strides = [1, 1]} : vector<8x256xf32> to vector<1x128xf32>
    %158 = vector.extract_strided_slice %151 {offsets = [6, 0], sizes = [1, 128], strides = [1, 1]} : vector<8x256xf32> to vector<1x128xf32>
    %c1_61 = arith.constant 1 : index
    %c0_62 = arith.constant 0 : index
    %c0_63 = arith.constant 0 : index
    %159 = vector.load %arg9[%c1_61, %c0_62, %c0_63] : memref<4x128x128xbf16, #tpu.memory_space<vmem>>, vector<1x128x128xbf16>
    %160 = vector.shape_cast %159 : vector<1x128x128xbf16> to vector<128x128xbf16>
    %161 = arith.truncf %149 : vector<8x128xf32> to vector<8x128xbf16>
    %cst_64 = arith.constant dense<0.000000e+00> : vector<8x128xf32>
    %162 = tpu.matmul %161, %160, %cst_64 {dimension_numbers = #tpu.dot_dimension_numbers<[1], [0], [0], [1], [0, 0, 1, 1], [], []>} : vector<8x128xbf16>, vector<128x128xbf16>, vector<8x128xf32> -> vector<8x128xf32>
    %163 = vector.broadcast %152 : vector<1x128xf32> to vector<8x128xf32>
    %164 = arith.addf %162, %163 : vector<8x128xf32>
    %165 = arith.addf %149, %164 : vector<8x128xf32>
    %cst_65 = arith.constant dense<0.000000e+00> : vector<8xf32>
    %166 = vector.multi_reduction <add>, %165, %cst_65 [1] : vector<8x128xf32> to vector<8xf32>
    %167 = vector.shape_cast %166 : vector<8xf32> to vector<8x1xf32>
    %cst_66 = arith.constant 1.280000e+02 : f32
    %168 = vector.broadcast %cst_66 : f32 to vector<8x1xf32>
    %169 = arith.divf %167, %168 : vector<8x1xf32>
    %170 = vector.broadcast %169 : vector<8x1xf32> to vector<8x128xf32>
    %171 = arith.subf %165, %170 : vector<8x128xf32>
    %172 = arith.mulf %171, %171 : vector<8x128xf32>
    %cst_67 = arith.constant dense<0.000000e+00> : vector<8xf32>
    %173 = vector.multi_reduction <add>, %172, %cst_67 [1] : vector<8x128xf32> to vector<8xf32>
    %174 = vector.shape_cast %173 : vector<8xf32> to vector<8x1xf32>
    %cst_68 = arith.constant 1.280000e+02 : f32
    %175 = vector.broadcast %cst_68 : f32 to vector<8x1xf32>
    %176 = arith.divf %174, %175 : vector<8x1xf32>
    %177 = vector.broadcast %169 : vector<8x1xf32> to vector<8x128xf32>
    %178 = arith.subf %165, %177 : vector<8x128xf32>
    %cst_69 = arith.constant 9.99999974E-6 : f32
    %179 = vector.broadcast %cst_69 : f32 to vector<8x1xf32>
    %180 = arith.addf %176, %179 : vector<8x1xf32>
    %181 = math.rsqrt %180 : vector<8x1xf32>
    %182 = vector.broadcast %181 : vector<8x1xf32> to vector<8x128xf32>
    %183 = arith.mulf %178, %182 : vector<8x128xf32>
    %184 = vector.broadcast %153 : vector<1x128xf32> to vector<8x128xf32>
    %185 = arith.mulf %183, %184 : vector<8x128xf32>
    %186 = vector.broadcast %154 : vector<1x128xf32> to vector<8x128xf32>
    %187 = arith.addf %185, %186 : vector<8x128xf32>
    %c1_70 = arith.constant 1 : index
    %c0_71 = arith.constant 0 : index
    %c0_72 = arith.constant 0 : index
    %188 = vector.load %arg10[%c1_70, %c0_71, %c0_72] : memref<4x128x256xbf16, #tpu.memory_space<vmem>>, vector<1x128x256xbf16>
    %189 = vector.shape_cast %188 : vector<1x128x256xbf16> to vector<128x256xbf16>
    %190 = arith.truncf %187 : vector<8x128xf32> to vector<8x128xbf16>
    %cst_73 = arith.constant dense<0.000000e+00> : vector<8x256xf32>
    %191 = tpu.matmul %190, %189, %cst_73 {dimension_numbers = #tpu.dot_dimension_numbers<[1], [0], [0], [1], [0, 0, 1, 1], [], []>} : vector<8x128xbf16>, vector<128x256xbf16>, vector<8x256xf32> -> vector<8x256xf32>
    %192 = vector.broadcast %155 : vector<1x256xf32> to vector<8x256xf32>
    %193 = arith.addf %191, %192 : vector<8x256xf32>
    %cst_74 = arith.constant 5.000000e-01 : f32
    %194 = vector.broadcast %cst_74 : f32 to vector<8x256xf32>
    %195 = arith.mulf %194, %193 : vector<8x256xf32>
    %cst_75 = arith.constant 0.707106769 : f32
    %196 = vector.broadcast %cst_75 : f32 to vector<8x256xf32>
    %197 = arith.mulf %193, %196 : vector<8x256xf32>
    %198 = math.erf %197 : vector<8x256xf32>
    %cst_76 = arith.constant 1.000000e+00 : f32
    %199 = vector.broadcast %cst_76 : f32 to vector<8x256xf32>
    %200 = arith.addf %199, %198 : vector<8x256xf32>
    %201 = arith.mulf %195, %200 : vector<8x256xf32>
    %c1_77 = arith.constant 1 : index
    %c0_78 = arith.constant 0 : index
    %c0_79 = arith.constant 0 : index
    %202 = vector.load %arg11[%c1_77, %c0_78, %c0_79] : memref<4x256x128xbf16, #tpu.memory_space<vmem>>, vector<1x256x128xbf16>
    %203 = vector.shape_cast %202 : vector<1x256x128xbf16> to vector<256x128xbf16>
    %204 = arith.truncf %201 : vector<8x256xf32> to vector<8x256xbf16>
    %cst_80 = arith.constant dense<0.000000e+00> : vector<8x128xf32>
    %205 = tpu.matmul %204, %203, %cst_80 {dimension_numbers = #tpu.dot_dimension_numbers<[1], [0], [0], [1], [0, 0, 1, 1], [], []>} : vector<8x256xbf16>, vector<256x128xbf16>, vector<8x128xf32> -> vector<8x128xf32>
    %206 = vector.broadcast %156 : vector<1x128xf32> to vector<8x128xf32>
    %207 = arith.addf %205, %206 : vector<8x128xf32>
    %208 = arith.addf %187, %207 : vector<8x128xf32>
    %cst_81 = arith.constant dense<0.000000e+00> : vector<8xf32>
    %209 = vector.multi_reduction <add>, %208, %cst_81 [1] : vector<8x128xf32> to vector<8xf32>
    %210 = vector.shape_cast %209 : vector<8xf32> to vector<8x1xf32>
    %cst_82 = arith.constant 1.280000e+02 : f32
    %211 = vector.broadcast %cst_82 : f32 to vector<8x1xf32>
    %212 = arith.divf %210, %211 : vector<8x1xf32>
    %213 = vector.broadcast %212 : vector<8x1xf32> to vector<8x128xf32>
    %214 = arith.subf %208, %213 : vector<8x128xf32>
    %215 = arith.mulf %214, %214 : vector<8x128xf32>
    %cst_83 = arith.constant dense<0.000000e+00> : vector<8xf32>
    %216 = vector.multi_reduction <add>, %215, %cst_83 [1] : vector<8x128xf32> to vector<8xf32>
    %217 = vector.shape_cast %216 : vector<8xf32> to vector<8x1xf32>
    %cst_84 = arith.constant 1.280000e+02 : f32
    %218 = vector.broadcast %cst_84 : f32 to vector<8x1xf32>
    %219 = arith.divf %217, %218 : vector<8x1xf32>
    %220 = vector.broadcast %212 : vector<8x1xf32> to vector<8x128xf32>
    %221 = arith.subf %208, %220 : vector<8x128xf32>
    %cst_85 = arith.constant 9.99999974E-6 : f32
    %222 = vector.broadcast %cst_85 : f32 to vector<8x1xf32>
    %223 = arith.addf %219, %222 : vector<8x1xf32>
    %224 = math.rsqrt %223 : vector<8x1xf32>
    %225 = vector.broadcast %224 : vector<8x1xf32> to vector<8x128xf32>
    %226 = arith.mulf %221, %225 : vector<8x128xf32>
    %227 = vector.broadcast %157 : vector<1x128xf32> to vector<8x128xf32>
    %228 = arith.mulf %226, %227 : vector<8x128xf32>
    %229 = vector.broadcast %158 : vector<1x128xf32> to vector<8x128xf32>
    %230 = arith.addf %228, %229 : vector<8x128xf32>
    %c2 = arith.constant 2 : index
    %c0_86 = arith.constant 0 : index
    %c0_87 = arith.constant 0 : index
    %231 = vector.load %arg12[%c2, %c0_86, %c0_87] : memref<4x8x256xf32, #tpu.memory_space<vmem>>, vector<1x8x256xf32>
    %232 = vector.shape_cast %231 : vector<1x8x256xf32> to vector<8x256xf32>
    %233 = vector.extract_strided_slice %232 {offsets = [0, 0], sizes = [1, 128], strides = [1, 1]} : vector<8x256xf32> to vector<1x128xf32>
    %234 = vector.extract_strided_slice %232 {offsets = [1, 0], sizes = [1, 128], strides = [1, 1]} : vector<8x256xf32> to vector<1x128xf32>
    %235 = vector.extract_strided_slice %232 {offsets = [2, 0], sizes = [1, 128], strides = [1, 1]} : vector<8x256xf32> to vector<1x128xf32>
    %236 = vector.extract_strided_slice %232 {offsets = [3, 0], sizes = [1, 256], strides = [1, 1]} : vector<8x256xf32> to vector<1x256xf32>
    %237 = vector.extract_strided_slice %232 {offsets = [4, 0], sizes = [1, 128], strides = [1, 1]} : vector<8x256xf32> to vector<1x128xf32>
    %238 = vector.extract_strided_slice %232 {offsets = [5, 0], sizes = [1, 128], strides = [1, 1]} : vector<8x256xf32> to vector<1x128xf32>
    %239 = vector.extract_strided_slice %232 {offsets = [6, 0], sizes = [1, 128], strides = [1, 1]} : vector<8x256xf32> to vector<1x128xf32>
    %c2_88 = arith.constant 2 : index
    %c0_89 = arith.constant 0 : index
    %c0_90 = arith.constant 0 : index
    %240 = vector.load %arg9[%c2_88, %c0_89, %c0_90] : memref<4x128x128xbf16, #tpu.memory_space<vmem>>, vector<1x128x128xbf16>
    %241 = vector.shape_cast %240 : vector<1x128x128xbf16> to vector<128x128xbf16>
    %242 = arith.truncf %230 : vector<8x128xf32> to vector<8x128xbf16>
    %cst_91 = arith.constant dense<0.000000e+00> : vector<8x128xf32>
    %243 = tpu.matmul %242, %241, %cst_91 {dimension_numbers = #tpu.dot_dimension_numbers<[1], [0], [0], [1], [0, 0, 1, 1], [], []>} : vector<8x128xbf16>, vector<128x128xbf16>, vector<8x128xf32> -> vector<8x128xf32>
    %244 = vector.broadcast %233 : vector<1x128xf32> to vector<8x128xf32>
    %245 = arith.addf %243, %244 : vector<8x128xf32>
    %246 = arith.addf %230, %245 : vector<8x128xf32>
    %cst_92 = arith.constant dense<0.000000e+00> : vector<8xf32>
    %247 = vector.multi_reduction <add>, %246, %cst_92 [1] : vector<8x128xf32> to vector<8xf32>
    %248 = vector.shape_cast %247 : vector<8xf32> to vector<8x1xf32>
    %cst_93 = arith.constant 1.280000e+02 : f32
    %249 = vector.broadcast %cst_93 : f32 to vector<8x1xf32>
    %250 = arith.divf %248, %249 : vector<8x1xf32>
    %251 = vector.broadcast %250 : vector<8x1xf32> to vector<8x128xf32>
    %252 = arith.subf %246, %251 : vector<8x128xf32>
    %253 = arith.mulf %252, %252 : vector<8x128xf32>
    %cst_94 = arith.constant dense<0.000000e+00> : vector<8xf32>
    %254 = vector.multi_reduction <add>, %253, %cst_94 [1] : vector<8x128xf32> to vector<8xf32>
    %255 = vector.shape_cast %254 : vector<8xf32> to vector<8x1xf32>
    %cst_95 = arith.constant 1.280000e+02 : f32
    %256 = vector.broadcast %cst_95 : f32 to vector<8x1xf32>
    %257 = arith.divf %255, %256 : vector<8x1xf32>
    %258 = vector.broadcast %250 : vector<8x1xf32> to vector<8x128xf32>
    %259 = arith.subf %246, %258 : vector<8x128xf32>
    %cst_96 = arith.constant 9.99999974E-6 : f32
    %260 = vector.broadcast %cst_96 : f32 to vector<8x1xf32>
    %261 = arith.addf %257, %260 : vector<8x1xf32>
    %262 = math.rsqrt %261 : vector<8x1xf32>
    %263 = vector.broadcast %262 : vector<8x1xf32> to vector<8x128xf32>
    %264 = arith.mulf %259, %263 : vector<8x128xf32>
    %265 = vector.broadcast %234 : vector<1x128xf32> to vector<8x128xf32>
    %266 = arith.mulf %264, %265 : vector<8x128xf32>
    %267 = vector.broadcast %235 : vector<1x128xf32> to vector<8x128xf32>
    %268 = arith.addf %266, %267 : vector<8x128xf32>
    %c2_97 = arith.constant 2 : index
    %c0_98 = arith.constant 0 : index
    %c0_99 = arith.constant 0 : index
    %269 = vector.load %arg10[%c2_97, %c0_98, %c0_99] : memref<4x128x256xbf16, #tpu.memory_space<vmem>>, vector<1x128x256xbf16>
    %270 = vector.shape_cast %269 : vector<1x128x256xbf16> to vector<128x256xbf16>
    %271 = arith.truncf %268 : vector<8x128xf32> to vector<8x128xbf16>
    %cst_100 = arith.constant dense<0.000000e+00> : vector<8x256xf32>
    %272 = tpu.matmul %271, %270, %cst_100 {dimension_numbers = #tpu.dot_dimension_numbers<[1], [0], [0], [1], [0, 0, 1, 1], [], []>} : vector<8x128xbf16>, vector<128x256xbf16>, vector<8x256xf32> -> vector<8x256xf32>
    %273 = vector.broadcast %236 : vector<1x256xf32> to vector<8x256xf32>
    %274 = arith.addf %272, %273 : vector<8x256xf32>
    %cst_101 = arith.constant 5.000000e-01 : f32
    %275 = vector.broadcast %cst_101 : f32 to vector<8x256xf32>
    %276 = arith.mulf %275, %274 : vector<8x256xf32>
    %cst_102 = arith.constant 0.707106769 : f32
    %277 = vector.broadcast %cst_102 : f32 to vector<8x256xf32>
    %278 = arith.mulf %274, %277 : vector<8x256xf32>
    %279 = math.erf %278 : vector<8x256xf32>
    %cst_103 = arith.constant 1.000000e+00 : f32
    %280 = vector.broadcast %cst_103 : f32 to vector<8x256xf32>
    %281 = arith.addf %280, %279 : vector<8x256xf32>
    %282 = arith.mulf %276, %281 : vector<8x256xf32>
    %c2_104 = arith.constant 2 : index
    %c0_105 = arith.constant 0 : index
    %c0_106 = arith.constant 0 : index
    %283 = vector.load %arg11[%c2_104, %c0_105, %c0_106] : memref<4x256x128xbf16, #tpu.memory_space<vmem>>, vector<1x256x128xbf16>
    %284 = vector.shape_cast %283 : vector<1x256x128xbf16> to vector<256x128xbf16>
    %285 = arith.truncf %282 : vector<8x256xf32> to vector<8x256xbf16>
    %cst_107 = arith.constant dense<0.000000e+00> : vector<8x128xf32>
    %286 = tpu.matmul %285, %284, %cst_107 {dimension_numbers = #tpu.dot_dimension_numbers<[1], [0], [0], [1], [0, 0, 1, 1], [], []>} : vector<8x256xbf16>, vector<256x128xbf16>, vector<8x128xf32> -> vector<8x128xf32>
    %287 = vector.broadcast %237 : vector<1x128xf32> to vector<8x128xf32>
    %288 = arith.addf %286, %287 : vector<8x128xf32>
    %289 = arith.addf %268, %288 : vector<8x128xf32>
    %cst_108 = arith.constant dense<0.000000e+00> : vector<8xf32>
    %290 = vector.multi_reduction <add>, %289, %cst_108 [1] : vector<8x128xf32> to vector<8xf32>
    %291 = vector.shape_cast %290 : vector<8xf32> to vector<8x1xf32>
    %cst_109 = arith.constant 1.280000e+02 : f32
    %292 = vector.broadcast %cst_109 : f32 to vector<8x1xf32>
    %293 = arith.divf %291, %292 : vector<8x1xf32>
    %294 = vector.broadcast %293 : vector<8x1xf32> to vector<8x128xf32>
    %295 = arith.subf %289, %294 : vector<8x128xf32>
    %296 = arith.mulf %295, %295 : vector<8x128xf32>
    %cst_110 = arith.constant dense<0.000000e+00> : vector<8xf32>
    %297 = vector.multi_reduction <add>, %296, %cst_110 [1] : vector<8x128xf32> to vector<8xf32>
    %298 = vector.shape_cast %297 : vector<8xf32> to vector<8x1xf32>
    %cst_111 = arith.constant 1.280000e+02 : f32
    %299 = vector.broadcast %cst_111 : f32 to vector<8x1xf32>
    %300 = arith.divf %298, %299 : vector<8x1xf32>
    %301 = vector.broadcast %293 : vector<8x1xf32> to vector<8x128xf32>
    %302 = arith.subf %289, %301 : vector<8x128xf32>
    %cst_112 = arith.constant 9.99999974E-6 : f32
    %303 = vector.broadcast %cst_112 : f32 to vector<8x1xf32>
    %304 = arith.addf %300, %303 : vector<8x1xf32>
    %305 = math.rsqrt %304 : vector<8x1xf32>
    %306 = vector.broadcast %305 : vector<8x1xf32> to vector<8x128xf32>
    %307 = arith.mulf %302, %306 : vector<8x128xf32>
    %308 = vector.broadcast %238 : vector<1x128xf32> to vector<8x128xf32>
    %309 = arith.mulf %307, %308 : vector<8x128xf32>
    %310 = vector.broadcast %239 : vector<1x128xf32> to vector<8x128xf32>
    %311 = arith.addf %309, %310 : vector<8x128xf32>
    %c3 = arith.constant 3 : index
    %c0_113 = arith.constant 0 : index
    %c0_114 = arith.constant 0 : index
    %312 = vector.load %arg12[%c3, %c0_113, %c0_114] : memref<4x8x256xf32, #tpu.memory_space<vmem>>, vector<1x8x256xf32>
    %313 = vector.shape_cast %312 : vector<1x8x256xf32> to vector<8x256xf32>
    %314 = vector.extract_strided_slice %313 {offsets = [0, 0], sizes = [1, 128], strides = [1, 1]} : vector<8x256xf32> to vector<1x128xf32>
    %315 = vector.extract_strided_slice %313 {offsets = [1, 0], sizes = [1, 128], strides = [1, 1]} : vector<8x256xf32> to vector<1x128xf32>
    %316 = vector.extract_strided_slice %313 {offsets = [2, 0], sizes = [1, 128], strides = [1, 1]} : vector<8x256xf32> to vector<1x128xf32>
    %317 = vector.extract_strided_slice %313 {offsets = [3, 0], sizes = [1, 256], strides = [1, 1]} : vector<8x256xf32> to vector<1x256xf32>
    %318 = vector.extract_strided_slice %313 {offsets = [4, 0], sizes = [1, 128], strides = [1, 1]} : vector<8x256xf32> to vector<1x128xf32>
    %319 = vector.extract_strided_slice %313 {offsets = [5, 0], sizes = [1, 128], strides = [1, 1]} : vector<8x256xf32> to vector<1x128xf32>
    %320 = vector.extract_strided_slice %313 {offsets = [6, 0], sizes = [1, 128], strides = [1, 1]} : vector<8x256xf32> to vector<1x128xf32>
    %c3_115 = arith.constant 3 : index
    %c0_116 = arith.constant 0 : index
    %c0_117 = arith.constant 0 : index
    %321 = vector.load %arg9[%c3_115, %c0_116, %c0_117] : memref<4x128x128xbf16, #tpu.memory_space<vmem>>, vector<1x128x128xbf16>
    %322 = vector.shape_cast %321 : vector<1x128x128xbf16> to vector<128x128xbf16>
    %323 = arith.truncf %311 : vector<8x128xf32> to vector<8x128xbf16>
    %cst_118 = arith.constant dense<0.000000e+00> : vector<8x128xf32>
    %324 = tpu.matmul %323, %322, %cst_118 {dimension_numbers = #tpu.dot_dimension_numbers<[1], [0], [0], [1], [0, 0, 1, 1], [], []>} : vector<8x128xbf16>, vector<128x128xbf16>, vector<8x128xf32> -> vector<8x128xf32>
    %325 = vector.broadcast %314 : vector<1x128xf32> to vector<8x128xf32>
    %326 = arith.addf %324, %325 : vector<8x128xf32>
    %327 = arith.addf %311, %326 : vector<8x128xf32>
    %cst_119 = arith.constant dense<0.000000e+00> : vector<8xf32>
    %328 = vector.multi_reduction <add>, %327, %cst_119 [1] : vector<8x128xf32> to vector<8xf32>
    %329 = vector.shape_cast %328 : vector<8xf32> to vector<8x1xf32>
    %cst_120 = arith.constant 1.280000e+02 : f32
    %330 = vector.broadcast %cst_120 : f32 to vector<8x1xf32>
    %331 = arith.divf %329, %330 : vector<8x1xf32>
    %332 = vector.broadcast %331 : vector<8x1xf32> to vector<8x128xf32>
    %333 = arith.subf %327, %332 : vector<8x128xf32>
    %334 = arith.mulf %333, %333 : vector<8x128xf32>
    %cst_121 = arith.constant dense<0.000000e+00> : vector<8xf32>
    %335 = vector.multi_reduction <add>, %334, %cst_121 [1] : vector<8x128xf32> to vector<8xf32>
    %336 = vector.shape_cast %335 : vector<8xf32> to vector<8x1xf32>
    %cst_122 = arith.constant 1.280000e+02 : f32
    %337 = vector.broadcast %cst_122 : f32 to vector<8x1xf32>
    %338 = arith.divf %336, %337 : vector<8x1xf32>
    %339 = vector.broadcast %331 : vector<8x1xf32> to vector<8x128xf32>
    %340 = arith.subf %327, %339 : vector<8x128xf32>
    %cst_123 = arith.constant 9.99999974E-6 : f32
    %341 = vector.broadcast %cst_123 : f32 to vector<8x1xf32>
    %342 = arith.addf %338, %341 : vector<8x1xf32>
    %343 = math.rsqrt %342 : vector<8x1xf32>
    %344 = vector.broadcast %343 : vector<8x1xf32> to vector<8x128xf32>
    %345 = arith.mulf %340, %344 : vector<8x128xf32>
    %346 = vector.broadcast %315 : vector<1x128xf32> to vector<8x128xf32>
    %347 = arith.mulf %345, %346 : vector<8x128xf32>
    %348 = vector.broadcast %316 : vector<1x128xf32> to vector<8x128xf32>
    %349 = arith.addf %347, %348 : vector<8x128xf32>
    %c3_124 = arith.constant 3 : index
    %c0_125 = arith.constant 0 : index
    %c0_126 = arith.constant 0 : index
    %350 = vector.load %arg10[%c3_124, %c0_125, %c0_126] : memref<4x128x256xbf16, #tpu.memory_space<vmem>>, vector<1x128x256xbf16>
    %351 = vector.shape_cast %350 : vector<1x128x256xbf16> to vector<128x256xbf16>
    %352 = arith.truncf %349 : vector<8x128xf32> to vector<8x128xbf16>
    %cst_127 = arith.constant dense<0.000000e+00> : vector<8x256xf32>
    %353 = tpu.matmul %352, %351, %cst_127 {dimension_numbers = #tpu.dot_dimension_numbers<[1], [0], [0], [1], [0, 0, 1, 1], [], []>} : vector<8x128xbf16>, vector<128x256xbf16>, vector<8x256xf32> -> vector<8x256xf32>
    %354 = vector.broadcast %317 : vector<1x256xf32> to vector<8x256xf32>
    %355 = arith.addf %353, %354 : vector<8x256xf32>
    %cst_128 = arith.constant 5.000000e-01 : f32
    %356 = vector.broadcast %cst_128 : f32 to vector<8x256xf32>
    %357 = arith.mulf %356, %355 : vector<8x256xf32>
    %cst_129 = arith.constant 0.707106769 : f32
    %358 = vector.broadcast %cst_129 : f32 to vector<8x256xf32>
    %359 = arith.mulf %355, %358 : vector<8x256xf32>
    %360 = math.erf %359 : vector<8x256xf32>
    %cst_130 = arith.constant 1.000000e+00 : f32
    %361 = vector.broadcast %cst_130 : f32 to vector<8x256xf32>
    %362 = arith.addf %361, %360 : vector<8x256xf32>
    %363 = arith.mulf %357, %362 : vector<8x256xf32>
    %c3_131 = arith.constant 3 : index
    %c0_132 = arith.constant 0 : index
    %c0_133 = arith.constant 0 : index
    %364 = vector.load %arg11[%c3_131, %c0_132, %c0_133] : memref<4x256x128xbf16, #tpu.memory_space<vmem>>, vector<1x256x128xbf16>
    %365 = vector.shape_cast %364 : vector<1x256x128xbf16> to vector<256x128xbf16>
    %366 = arith.truncf %363 : vector<8x256xf32> to vector<8x256xbf16>
    %cst_134 = arith.constant dense<0.000000e+00> : vector<8x128xf32>
    %367 = tpu.matmul %366, %365, %cst_134 {dimension_numbers = #tpu.dot_dimension_numbers<[1], [0], [0], [1], [0, 0, 1, 1], [], []>} : vector<8x256xbf16>, vector<256x128xbf16>, vector<8x128xf32> -> vector<8x128xf32>
    %368 = vector.broadcast %318 : vector<1x128xf32> to vector<8x128xf32>
    %369 = arith.addf %367, %368 : vector<8x128xf32>
    %370 = arith.addf %349, %369 : vector<8x128xf32>
    %cst_135 = arith.constant dense<0.000000e+00> : vector<8xf32>
    %371 = vector.multi_reduction <add>, %370, %cst_135 [1] : vector<8x128xf32> to vector<8xf32>
    %372 = vector.shape_cast %371 : vector<8xf32> to vector<8x1xf32>
    %cst_136 = arith.constant 1.280000e+02 : f32
    %373 = vector.broadcast %cst_136 : f32 to vector<8x1xf32>
    %374 = arith.divf %372, %373 : vector<8x1xf32>
    %375 = vector.broadcast %374 : vector<8x1xf32> to vector<8x128xf32>
    %376 = arith.subf %370, %375 : vector<8x128xf32>
    %377 = arith.mulf %376, %376 : vector<8x128xf32>
    %cst_137 = arith.constant dense<0.000000e+00> : vector<8xf32>
    %378 = vector.multi_reduction <add>, %377, %cst_137 [1] : vector<8x128xf32> to vector<8xf32>
    %379 = vector.shape_cast %378 : vector<8xf32> to vector<8x1xf32>
    %cst_138 = arith.constant 1.280000e+02 : f32
    %380 = vector.broadcast %cst_138 : f32 to vector<8x1xf32>
    %381 = arith.divf %379, %380 : vector<8x1xf32>
    %382 = vector.broadcast %374 : vector<8x1xf32> to vector<8x128xf32>
    %383 = arith.subf %370, %382 : vector<8x128xf32>
    %cst_139 = arith.constant 9.99999974E-6 : f32
    %384 = vector.broadcast %cst_139 : f32 to vector<8x1xf32>
    %385 = arith.addf %381, %384 : vector<8x1xf32>
    %386 = math.rsqrt %385 : vector<8x1xf32>
    %387 = vector.broadcast %386 : vector<8x1xf32> to vector<8x128xf32>
    %388 = arith.mulf %383, %387 : vector<8x128xf32>
    %389 = vector.broadcast %319 : vector<1x128xf32> to vector<8x128xf32>
    %390 = arith.mulf %388, %389 : vector<8x128xf32>
    %391 = vector.broadcast %320 : vector<1x128xf32> to vector<8x128xf32>
    %392 = arith.addf %390, %391 : vector<8x128xf32>
    %c0_140 = arith.constant 0 : index
    %c0_141 = arith.constant 0 : index
    %393 = vector.load %arg13[%c0_140, %c0_141] : memref<128x128xbf16, #tpu.memory_space<vmem>>, vector<128x128xbf16>
    %394 = arith.truncf %392 : vector<8x128xf32> to vector<8x128xbf16>
    %cst_142 = arith.constant dense<0.000000e+00> : vector<8x128xf32>
    %395 = tpu.matmul %394, %393, %cst_142 {dimension_numbers = #tpu.dot_dimension_numbers<[1], [0], [0], [1], [0, 0, 1, 1], [], []>} : vector<8x128xbf16>, vector<128x128xbf16>, vector<8x128xf32> -> vector<8x128xf32>
    %c0_143 = arith.constant 0 : index
    %c0_144 = arith.constant 0 : index
    %396 = vector.load %arg14[%c0_143, %c0_144] : memref<1x128xf32, #tpu.memory_space<vmem>>, vector<1x128xf32>
    %397 = vector.broadcast %396 : vector<1x128xf32> to vector<8x128xf32>
    %398 = arith.addf %395, %397 : vector<8x128xf32>
    %c0_145 = arith.constant 0 : index
    %c0_146 = arith.constant 0 : index
    %399 = vector.load %arg15[%c0_145, %c0_146] : memref<128x64xbf16, #tpu.memory_space<vmem>>, vector<128x64xbf16>
    %400 = arith.truncf %398 : vector<8x128xf32> to vector<8x128xbf16>
    %cst_147 = arith.constant dense<0.000000e+00> : vector<8x64xf32>
    %401 = tpu.matmul %400, %399, %cst_147 {dimension_numbers = #tpu.dot_dimension_numbers<[1], [0], [0], [1], [0, 0, 1, 1], [], []>} : vector<8x128xbf16>, vector<128x64xbf16>, vector<8x64xf32> -> vector<8x64xf32>
    %c0_148 = arith.constant 0 : index
    %c0_149 = arith.constant 0 : index
    %402 = vector.load %arg16[%c0_148, %c0_149] : memref<1x64xf32, #tpu.memory_space<vmem>>, vector<1x64xf32>
    %403 = vector.broadcast %402 : vector<1x64xf32> to vector<8x64xf32>
    %404 = arith.addf %401, %403 : vector<8x64xf32>
    %c0_150 = arith.constant 0 : index
    %c0_151 = arith.constant 0 : index
    %405 = vector.load %arg17[%c0_150, %c0_151] : memref<1x64xf32, #tpu.memory_space<vmem>>, vector<1x64xf32>
    %c0_152 = arith.constant 0 : index
    %c0_153 = arith.constant 0 : index
    %406 = vector.load %arg18[%c0_152, %c0_153] : memref<1x64xf32, #tpu.memory_space<vmem>>, vector<1x64xf32>
    %cst_154 = arith.constant dense<0.000000e+00> : vector<8xf32>
    %407 = vector.multi_reduction <add>, %404, %cst_154 [1] : vector<8x64xf32> to vector<8xf32>
    %408 = vector.shape_cast %407 : vector<8xf32> to vector<8x1xf32>
    %cst_155 = arith.constant 6.400000e+01 : f32
    %409 = vector.broadcast %cst_155 : f32 to vector<8x1xf32>
    %410 = arith.divf %408, %409 : vector<8x1xf32>
    %411 = vector.broadcast %410 : vector<8x1xf32> to vector<8x64xf32>
    %412 = arith.subf %404, %411 : vector<8x64xf32>
    %413 = arith.mulf %412, %412 : vector<8x64xf32>
    %cst_156 = arith.constant dense<0.000000e+00> : vector<8xf32>
    %414 = vector.multi_reduction <add>, %413, %cst_156 [1] : vector<8x64xf32> to vector<8xf32>
    %415 = vector.shape_cast %414 : vector<8xf32> to vector<8x1xf32>
    %cst_157 = arith.constant 6.400000e+01 : f32
    %416 = vector.broadcast %cst_157 : f32 to vector<8x1xf32>
    %417 = arith.divf %415, %416 : vector<8x1xf32>
    %418 = vector.broadcast %410 : vector<8x1xf32> to vector<8x64xf32>
    %419 = arith.subf %404, %418 : vector<8x64xf32>
    %cst_158 = arith.constant 9.99999974E-6 : f32
    %420 = vector.broadcast %cst_158 : f32 to vector<8x1xf32>
    %421 = arith.addf %417, %420 : vector<8x1xf32>
    %422 = math.rsqrt %421 : vector<8x1xf32>
    %423 = vector.broadcast %422 : vector<8x1xf32> to vector<8x64xf32>
    %424 = arith.mulf %419, %423 : vector<8x64xf32>
    %425 = vector.broadcast %405 : vector<1x64xf32> to vector<8x64xf32>
    %426 = arith.mulf %424, %425 : vector<8x64xf32>
    %427 = vector.broadcast %406 : vector<1x64xf32> to vector<8x64xf32>
    %428 = arith.addf %426, %427 : vector<8x64xf32>
    %cst_159 = arith.constant 5.000000e-01 : f32
    %429 = vector.broadcast %cst_159 : f32 to vector<8x64xf32>
    %430 = arith.mulf %429, %428 : vector<8x64xf32>
    %cst_160 = arith.constant 0.707106769 : f32
    %431 = vector.broadcast %cst_160 : f32 to vector<8x64xf32>
    %432 = arith.mulf %428, %431 : vector<8x64xf32>
    %433 = math.erf %432 : vector<8x64xf32>
    %cst_161 = arith.constant 1.000000e+00 : f32
    %434 = vector.broadcast %cst_161 : f32 to vector<8x64xf32>
    %435 = arith.addf %434, %433 : vector<8x64xf32>
    %436 = arith.mulf %430, %435 : vector<8x64xf32>
    %c0_162 = arith.constant 0 : index
    %c0_163 = arith.constant 0 : index
    %437 = vector.load %arg19[%c0_162, %c0_163] : memref<64x32xbf16, #tpu.memory_space<vmem>>, vector<64x32xbf16>
    %438 = arith.truncf %436 : vector<8x64xf32> to vector<8x64xbf16>
    %cst_164 = arith.constant dense<0.000000e+00> : vector<8x32xf32>
    %439 = tpu.matmul %438, %437, %cst_164 {dimension_numbers = #tpu.dot_dimension_numbers<[1], [0], [0], [1], [0, 0, 1, 1], [], []>} : vector<8x64xbf16>, vector<64x32xbf16>, vector<8x32xf32> -> vector<8x32xf32>
    %c0_165 = arith.constant 0 : index
    %c0_166 = arith.constant 0 : index
    %440 = vector.load %arg20[%c0_165, %c0_166] : memref<1x32xf32, #tpu.memory_space<vmem>>, vector<1x32xf32>
    %441 = vector.broadcast %440 : vector<1x32xf32> to vector<8x32xf32>
    %442 = arith.addf %439, %441 : vector<8x32xf32>
    %c0_167 = arith.constant 0 : index
    %c0_168 = arith.constant 0 : index
    %443 = vector.load %arg21[%c0_167, %c0_168] : memref<1x32xf32, #tpu.memory_space<vmem>>, vector<1x32xf32>
    %c0_169 = arith.constant 0 : index
    %c0_170 = arith.constant 0 : index
    %444 = vector.load %arg22[%c0_169, %c0_170] : memref<1x32xf32, #tpu.memory_space<vmem>>, vector<1x32xf32>
    %cst_171 = arith.constant dense<0.000000e+00> : vector<8xf32>
    %445 = vector.multi_reduction <add>, %442, %cst_171 [1] : vector<8x32xf32> to vector<8xf32>
    %446 = vector.shape_cast %445 : vector<8xf32> to vector<8x1xf32>
    %cst_172 = arith.constant 3.200000e+01 : f32
    %447 = vector.broadcast %cst_172 : f32 to vector<8x1xf32>
    %448 = arith.divf %446, %447 : vector<8x1xf32>
    %449 = vector.broadcast %448 : vector<8x1xf32> to vector<8x32xf32>
    %450 = arith.subf %442, %449 : vector<8x32xf32>
    %451 = arith.mulf %450, %450 : vector<8x32xf32>
    %cst_173 = arith.constant dense<0.000000e+00> : vector<8xf32>
    %452 = vector.multi_reduction <add>, %451, %cst_173 [1] : vector<8x32xf32> to vector<8xf32>
    %453 = vector.shape_cast %452 : vector<8xf32> to vector<8x1xf32>
    %cst_174 = arith.constant 3.200000e+01 : f32
    %454 = vector.broadcast %cst_174 : f32 to vector<8x1xf32>
    %455 = arith.divf %453, %454 : vector<8x1xf32>
    %456 = vector.broadcast %448 : vector<8x1xf32> to vector<8x32xf32>
    %457 = arith.subf %442, %456 : vector<8x32xf32>
    %cst_175 = arith.constant 9.99999974E-6 : f32
    %458 = vector.broadcast %cst_175 : f32 to vector<8x1xf32>
    %459 = arith.addf %455, %458 : vector<8x1xf32>
    %460 = math.rsqrt %459 : vector<8x1xf32>
    %461 = vector.broadcast %460 : vector<8x1xf32> to vector<8x32xf32>
    %462 = arith.mulf %457, %461 : vector<8x32xf32>
    %463 = vector.broadcast %443 : vector<1x32xf32> to vector<8x32xf32>
    %464 = arith.mulf %462, %463 : vector<8x32xf32>
    %465 = vector.broadcast %444 : vector<1x32xf32> to vector<8x32xf32>
    %466 = arith.addf %464, %465 : vector<8x32xf32>
    %cst_176 = arith.constant 5.000000e-01 : f32
    %467 = vector.broadcast %cst_176 : f32 to vector<8x32xf32>
    %468 = arith.mulf %467, %466 : vector<8x32xf32>
    %cst_177 = arith.constant 0.707106769 : f32
    %469 = vector.broadcast %cst_177 : f32 to vector<8x32xf32>
    %470 = arith.mulf %466, %469 : vector<8x32xf32>
    %471 = math.erf %470 : vector<8x32xf32>
    %cst_178 = arith.constant 1.000000e+00 : f32
    %472 = vector.broadcast %cst_178 : f32 to vector<8x32xf32>
    %473 = arith.addf %472, %471 : vector<8x32xf32>
    %474 = arith.mulf %468, %473 : vector<8x32xf32>
    %c0_179 = arith.constant 0 : index
    %c0_180 = arith.constant 0 : index
    %475 = vector.load %arg23[%c0_179, %c0_180] : memref<32x8xbf16, #tpu.memory_space<vmem>>, vector<32x8xbf16>
    %476 = arith.truncf %474 : vector<8x32xf32> to vector<8x32xbf16>
    %cst_181 = arith.constant dense<0.000000e+00> : vector<8x8xf32>
    %477 = tpu.matmul %476, %475, %cst_181 {dimension_numbers = #tpu.dot_dimension_numbers<[1], [0], [0], [1], [0, 0, 1, 1], [], []>} : vector<8x32xbf16>, vector<32x8xbf16>, vector<8x8xf32> -> vector<8x8xf32>
    %c0_182 = arith.constant 0 : index
    %c0_183 = arith.constant 0 : index
    %478 = vector.load %arg24[%c0_182, %c0_183] : memref<1x8xf32, #tpu.memory_space<vmem>>, vector<1x8xf32>
    %479 = vector.broadcast %478 : vector<1x8xf32> to vector<8x8xf32>
    %480 = arith.addf %477, %479 : vector<8x8xf32>
    %c0_184 = arith.constant 0 : index
    %c0_185 = arith.constant 0 : index
    %481 = vector.load %arg25[%c0_184, %c0_185] : memref<8x8xf32, #tpu.memory_space<vmem>>, vector<8x8xf32>
    tpu.vector_store %arg25[%c0_184, %c0_185], %480 {strides = array<i32>} : memref<8x8xf32, #tpu.memory_space<vmem>>, vector<8x8xf32>,
    return
  }
}

</mosaic_0001>

<bundles_post_ra>
// kernel: forward.1
= control target key start
LH: loop header
LB: loop body
LE: loop exit
PB: predicated region body
PF: predicated region fallthrough
CT: control target
= control target key end

     0   :  { %s4919_s0 = inlined_call_operand.vmem [shape: f32[8,116], index: 0, kind: input, shape index: {}]   ;;  %s4920_s1 = inlined_call_operand.vmem [shape: bf16[116,64], index: 1, kind: input, shape index: {}]   ;;  %s4921_s2 = inlined_call_operand.hbm [shape: f32[1,64], index: 2, kind: input, shape index: {}]   ;;  %s4922_s3 = inlined_call_operand.hbm [shape: f32[1,64], index: 3, kind: input, shape index: {}]   ;;  %s4923_s4 = inlined_call_operand.hbm [shape: f32[1,64], index: 4, kind: input, shape index: {}]   ;;  %s4924_s5 = inlined_call_operand.hbm [shape: bf16[64,128], index: 5, kind: input, shape index: {}]   ;;  %s4925_s6 = inlined_call_operand.hbm [shape: f32[1,128], index: 6, kind: input, shape index: {}]   ;;  %s4926_s7 = inlined_call_operand.hbm [shape: f32[1,128], index: 7, kind: input, shape index: {}]   ;;  %s4927_s8 = inlined_call_operand.hbm [shape: f32[1,128], index: 8, kind: input, shape index: {}]   ;;  %s4928_s9 = inlined_call_operand.vmem [shape: bf16[4,128,128], index: 9, kind: input, shape index: {}]   ;;  %s4929_s10 = inlined_call_operand.hbm [shape: bf16[4,128,256], index: 10, kind: input, shape index: {}]   ;;  %s4930_s11 = inlined_call_operand.hbm [shape: bf16[4,256,128], index: 11, kind: input, shape index: {}]   ;;  %s4931_s12 = inlined_call_operand.hbm [shape: f32[4,8,256], index: 12, kind: input, shape index: {}]   ;;  %s4932_s13 = inlined_call_operand.hbm [shape: bf16[128,128], index: 13, kind: input, shape index: {}]   ;;  %s4933_s14 = inlined_call_operand.hbm [shape: f32[1,128], index: 14, kind: input, shape index: {}]   ;;  %s4934_s15 = inlined_call_operand.vmem [shape: bf16[128,64], index: 15, kind: input, shape index: {}]   ;;  %s4935_s16 = inlined_call_operand.hbm [shape: f32[1,64], index: 16, kind: input, shape index: {}]   ;;  %s4936_s17 = inlined_call_operand.hbm [shape: f32[1,64], index: 17, kind: input, shape index: {}]   ;;  %s4937_s18 = inlined_call_operand.hbm [shape: f32[1,64], index: 18, kind: input, shape index: {}]   ;;  %s4938_s19 = inlined_call_operand.vmem [shape: bf16[64,32], index: 19, kind: input, shape index: {}]   ;;  %s4939_s20 = inlined_call_operand.hbm [shape: f32[1,32], index: 20, kind: input, shape index: {}]   ;;  %s4940_s21 = inlined_call_operand.hbm [shape: f32[1,32], index: 21, kind: input, shape index: {}]   ;;  %s4941_s22 = inlined_call_operand.hbm [shape: f32[1,32], index: 22, kind: input, shape index: {}]   ;;  %s4942_s23 = inlined_call_operand.vmem [shape: bf16[32,8], index: 23, kind: input, shape index: {}]   ;;  %s4943_s24 = inlined_call_operand.hbm [shape: f32[1,8], index: 24, kind: input, shape index: {}]   ;;  %s4944_s25 = inlined_call_operand.hbm [shape: f32[8,8], index: 25, kind: output, shape index: {}]  }
   0x1   :  { %4949 = sst [smem:[#allocation44_spill]] %s4919_s0 }
   0x2   :  { %4950 = sst [smem:[#allocation45_spill]] %s4920_s1 }
   0x3   :  { %4951 = sst [smem:[#allocation46_spill]] %s4921_s2 }
   0x4   :  { %4952 = sst [smem:[#allocation47_spill]] %s4922_s3 }
   0x5   :  { %4953 = sst [smem:[#allocation48_spill]] %s4923_s4 }
   0x6   :  { %4954 = sst [smem:[#allocation49_spill]] %s4924_s5 }
   0x7   :  { %4955 = sst [smem:[#allocation50_spill]] %s4925_s6 }
   0x8   :  { %4956 = sst [smem:[#allocation51_spill]] %s4926_s7 }
   0x9   :  { %4957 = sst [smem:[#allocation52_spill]] %s4927_s8 }
   0xa   :  { %4958 = sst [smem:[#allocation53_spill]] %s4928_s9 }
   0xb   :  { %30 = vsyncpa [#allocation3], 0 }
   0xc   :  { %31 = vsyncpa [#allocation6], 0 }
   0xd   :  { %32 = vsyncpa [#allocation9], 0 }
   0xe   :  { %33 = vsyncpa [#allocation12], 0 }
   0xf   :  { %34 = vsyncpa [#allocation15], 0 }
  0x10   :  { %35 = vsyncpa [#allocation18], 0 }
  0x11   :  { %36 = vsyncpa [#allocation21], 0 }
  0x12   :  { %37 = vsyncpa [#allocation24], 0 }
  0x13   :  { %38 = vsyncpa [#allocation27], 0 }
  0x14   :  { %39 = vsyncpa [#allocation30], 0 }
  0x15   :  { %40 = vsyncpa [#allocation4], 0  ;;  %s4316_s29 = smov [#allocation5]   ;;  %s4317_s6 = smov [#allocation8]  }
  0x16   :  { %s61_s2 = sshll.u32 %s4316_s29, 4  ;;  %s80_s30 = sshll.u32 %s4317_s6, 4  ;;  %s62_s2 = int_to_ptr.vmem [resolvable:$true] %s61_s2  ;;  %s81_s30 = int_to_ptr.vmem [resolvable:$true] %s80_s30 }
  0x17   :  { %s3902_s7 = scalar_lea.vmem %s62_s2, 16  ;;  %s3906_s3 = scalar_lea.vmem %s62_s2, 32 }
  0x18   :  { %p3903_p0 = scmp.ne.s32.totalorder %s62_s2, %s3902_s7  ;;  %p3907_p1 = scmp.lt.s32.totalorder %s62_s2, %s62_s2 }
  0x19   :  { %p3908_p2 = scmp.lt.s32.totalorder %s3906_s3, %s3902_s7 }
  0x1b   :  { %p3909_p3 = por %p3908_p2, %p3907_p1 }
  0x1d   :  { %p3910_p4 = pnand %p3909_p3, %p3903_p0 }
  0x1f   :  { %3913 = shalt.err (!%p3910_p4)
}
  0x20   :  { %s4959_s8 = sld [smem:[#allocation47_spill]]  ;;  %s3922_s27 = scalar_lea.vmem %s81_s30, 512 }
  0x21   :  { %p3923_p5 = scmp.ne.s32.totalorder %s81_s30, %s3922_s27  ;;  %p3927_p6 = scmp.lt.s32.totalorder %s81_s30, %s81_s30 }
  0x22   :  { %p3928_p7 = scmp.lt.s32.totalorder %s3922_s27, %s3922_s27 }
  0x24   :  { %p3929_p8 = por %p3928_p7, %p3927_p6 }
  0x26   :  { %64 = dma.hbm_to_vmem [thread:$0]  %s4959_s8, 16, %s62_s2, [#allocation6]  }
  0x27   :  { %p3930_p9 = pnand %p3929_p8, %p3923_p5 }
  0x29   :  { %3933 = shalt.err (!%p3930_p9)
}
  0x2a   :  { %s4947_s4 = smov 64   ;;  %s4319_s28 = smov 4  }
  0x2b   :  { %s4960_s0 = sld [smem:[#allocation49_spill]]  ;;  %s4320_s29 = smov [#allocation11]  }
  0x2c   :  { %s103_s6 = sshll.u32 %s4320_s29, 4  ;;  %s4321_s7 = smov [#allocation14]   ;;  %s104_s6 = int_to_ptr.vmem [resolvable:$true] %s103_s6 }
  0x2d   :  { %s124_s2 = sshll.u32 %s4321_s7, 4  ;;  %s3942_s3 = scalar_lea.vmem %s104_s6, 16  ;;  %s125_s2 = int_to_ptr.vmem [resolvable:$true] %s124_s2 }
  0x2e   :  { %p3943_p10 = scmp.ne.s32.totalorder %s104_s6, %s3942_s3  ;;  %s3946_s26 = scalar_lea.vmem %s104_s6, 32 }
  0x2f   :  { %p3947_p11 = scmp.lt.s32.totalorder %s104_s6, %s104_s6  ;;  %p3948_p12 = scmp.lt.s32.totalorder %s3946_s26, %s3942_s3 }
  0x31   :  { %86 = dma.hbm_to_vmem [thread:$0]  %s4960_s0, 512, %s81_s30, [#allocation9], %s4947_s4, %s4947_s4, %s4319_s28  }
  0x32   :  { %p3949_p13 = por %p3948_p12, %p3947_p11 }
  0x34   :  { %p3950_p0 = pnand %p3949_p13, %p3943_p10 }
  0x36   :  { %3953 = shalt.err (!%p3950_p0)
}
  0x37   :  { %s4961_s27 = sld [smem:[#allocation51_spill]]  ;;  %s3962_s9 = scalar_lea.vmem %s125_s2, 8192 }
  0x38   :  { %p3963_p1 = scmp.ne.s32.totalorder %s125_s2, %s3962_s9  ;;  %p3967_p2 = scmp.lt.s32.totalorder %s125_s2, %s125_s2 }
  0x39   :  { %p3968_p3 = scmp.lt.s32.totalorder %s3962_s9, %s3962_s9 }
  0x3b   :  { %p3969_p4 = por %p3968_p3, %p3967_p2 }
  0x3d   :  { %106 = dma.hbm_to_vmem [thread:$0]  %s4961_s27, 16, %s104_s6, [#allocation12]  }
  0x3e   :  { %p3970_p5 = pnand %p3969_p4, %p3963_p1 }
  0x40   :  { %3973 = shalt.err (!%p3970_p5)
}
  0x41   :  { %s4322_s30 = smov 128   ;;  %s4323_s5 = smov 8  }
  0x42   :  { %130 = dma.hbm_to_vmem [thread:$0]  %s4929_s10, 8192, %s125_s2, [#allocation15], %s4322_s30, %s4322_s30, %s4323_s5  }
  0x43   :  { %s4324_s7 = smov [#allocation17]  }
  0x44   :  { %s148_s3 = sshll.u32 %s4324_s7, 4  ;;  %s149_s3 = int_to_ptr.vmem [resolvable:$true] %s148_s3 }
  0x45   :  { %s3982_s26 = scalar_lea.vmem %s149_s3, 1024  ;;  %p3987_p7 = scmp.lt.s32.totalorder %s149_s3, %s149_s3 }
  0x46   :  { %p3983_p6 = scmp.ne.s32.totalorder %s149_s3, %s3982_s26  ;;  %p3988_p8 = scmp.lt.s32.totalorder %s3982_s26, %s3982_s26 }
  0x48   :  { %p3989_p9 = por %p3988_p8, %p3987_p7 }
  0x4a   :  { %p3990_p10 = pnand %p3989_p9, %p3983_p6 }
  0x4c   :  { %3993 = shalt.err (!%p3990_p10)
}
  0x4d   :  { %s4325_s6 = smov 256   ;;  %s4326_s1 = smov 16  }
  0x4e   :  { %154 = dma.hbm_to_vmem [thread:$0]  %s4931_s12, 1024, %s149_s3, [#allocation18], %s4325_s6, %s4325_s6, %s4326_s1  }
  0x4f   :  { %s4327_s9 = smov [#allocation20]   ;;  %s4328_s10 = smov [#allocation23]  }
  0x50   :  { %s173_s4 = sshll.u32 %s4327_s9, 4  ;;  %s195_s2 = sshll.u32 %s4328_s10, 4  ;;  %s174_s4 = int_to_ptr.vmem [resolvable:$true] %s173_s4  ;;  %s196_s2 = int_to_ptr.vmem [resolvable:$true] %s195_s2 }
  0x51   :  { %s4002_s30 = scalar_lea.vmem %s174_s4, 16  ;;  %s4006_s5 = scalar_lea.vmem %s174_s4, 32 }
  0x52   :  { %p4003_p11 = scmp.ne.s32.totalorder %s174_s4, %s4002_s30  ;;  %p4007_p12 = scmp.lt.s32.totalorder %s174_s4, %s174_s4 }
  0x53   :  { %p4008_p13 = scmp.lt.s32.totalorder %s4006_s5, %s4002_s30 }
  0x55   :  { %p4009_p0 = por %p4008_p13, %p4007_p12 }
  0x57   :  { %p4010_p1 = pnand %p4009_p0, %p4003_p11 }
  0x59   :  { %4013 = shalt.err (!%p4010_p1)
}
  0x5a   :  { %176 = dma.hbm_to_vmem [thread:$0]  %s4933_s14, 16, %s174_s4, [#allocation21]  }
  0x5b   :  { %s4022_s7 = scalar_lea.vmem %s196_s2, 16  ;;  %s4026_s12 = scalar_lea.vmem %s196_s2, 32 }
  0x5c   :  { %p4023_p2 = scmp.ne.s32.totalorder %s196_s2, %s4022_s7  ;;  %p4027_p3 = scmp.lt.s32.totalorder %s196_s2, %s196_s2 }
  0x5d   :  { %p4028_p4 = scmp.lt.s32.totalorder %s4026_s12, %s4022_s7 }
  0x5f   :  { %p4029_p5 = por %p4028_p4, %p4027_p3 }
  0x61   :  { %p4030_p6 = pnand %p4029_p5, %p4023_p2 }
  0x63   :  { %4033 = shalt.err (!%p4030_p6)
}
  0x64   :  { %198 = dma.hbm_to_vmem [thread:$0]  %s4936_s17, 16, %s196_s2, [#allocation24]  }
  0x65   :  { %s4329_s6 = smov [#allocation26]   ;;  %s4330_s8 = smov [#allocation29]  }
  0x66   :  { %s217_s1 = sshll.u32 %s4329_s6, 4  ;;  %s237_s27 = sshll.u32 %s4330_s8, 4  ;;  %s218_s1 = int_to_ptr.vmem [resolvable:$true] %s217_s1  ;;  %s238_s27 = int_to_ptr.vmem [resolvable:$true] %s237_s27 }
  0x67   :  { %s4042_s9 = scalar_lea.vmem %s218_s1, 16  ;;  %s4046_s14 = scalar_lea.vmem %s218_s1, 32 }
  0x68   :  { %p4043_p7 = scmp.ne.s32.totalorder %s218_s1, %s4042_s9  ;;  %p4047_p8 = scmp.lt.s32.totalorder %s218_s1, %s218_s1 }
  0x69   :  { %p4048_p9 = scmp.lt.s32.totalorder %s4046_s14, %s4042_s9 }
  0x6b   :  { %p4049_p10 = por %p4048_p9, %p4047_p8 }
  0x6d   :  { %p4050_p11 = pnand %p4049_p10, %p4043_p7 }
  0x6f   :  { %4053 = shalt.err (!%p4050_p11)
}
  0x70   :  { %220 = dma.hbm_to_vmem [thread:$0]  %s4939_s20, 16, %s218_s1, [#allocation27]  }
  0x71   :  { %s4062_s30 = scalar_lea.vmem %s238_s27, 16  ;;  %s4066_s17 = scalar_lea.vmem %s238_s27, 32 }
  0x72   :  { %p4063_p12 = scmp.ne.s32.totalorder %s238_s27, %s4062_s30  ;;  %p4067_p13 = scmp.lt.s32.totalorder %s238_s27, %s238_s27 }
  0x73   :  { %p4068_p0 = scmp.lt.s32.totalorder %s4066_s17, %s4062_s30 }
  0x75   :  { %p4069_p1 = por %p4068_p0, %p4067_p13 }
  0x77   :  { %p4070_p2 = pnand %p4069_p1, %p4063_p12 }
  0x79   :  { %4073 = shalt.err (!%p4070_p2)
}
  0x7a   :  { %240 = dma.hbm_to_vmem [thread:$0]  %s4941_s22, 16, %s238_s27, [#allocation30]  }
  0x7b   :  { %s4331_s0 = smov [#allocation2]   ;;  %s4332_s7 = smov [#allocation7]  }
  0x7c   :  { %s51_s29 = sshll.u32 %s4331_s0, 4  ;;  %s71_s12 = sshll.u32 %s4332_s7, 4  ;;  %s52_s29 = int_to_ptr.vmem [resolvable:$true] %s51_s29  ;;  %s72_s12 = int_to_ptr.vmem [resolvable:$true] %s71_s12 }
  0x7d   :  { %s4082_s3 = scalar_lea.vmem %s52_s29, 16  ;;  %s4086_s20 = scalar_lea.vmem %s52_s29, 32 }
  0x7e   :  { %p4083_p3 = scmp.ne.s32.totalorder %s52_s29, %s4082_s3  ;;  %p4087_p4 = scmp.lt.s32.totalorder %s52_s29, %s52_s29 }
  0x7f   :  { %p4088_p5 = scmp.lt.s32.totalorder %s4086_s20, %s4082_s3 }
  0x81   :  { %p4089_p6 = por %p4088_p5, %p4087_p4 }
  0x83   :  { %p4090_p7 = pnand %p4089_p6, %p4083_p3 }
  0x85   :  { %4093 = shalt.err (!%p4090_p7)
}
  0x86   :  { %s4962_s1 = sld [smem:[#allocation46_spill]]  ;;  %s4102_s8 = scalar_lea.vmem %s72_s12, 16 }
  0x87   :  { %p4103_p8 = scmp.ne.s32.totalorder %s72_s12, %s4102_s8  ;;  %s4106_s22 = scalar_lea.vmem %s72_s12, 32 }
  0x88   :  { %p4107_p9 = scmp.lt.s32.totalorder %s72_s12, %s72_s12  ;;  %p4108_p10 = scmp.lt.s32.totalorder %s4106_s22, %s4102_s8 }
  0x8a   :  { %p4109_p11 = por %p4108_p10, %p4107_p9 }
  0x8c   :  { %54 = dma.hbm_to_vmem [thread:$0]  %s4962_s1, 16, %s52_s29, [#allocation3]  }
  0x8d   :  { %p4110_p12 = pnand %p4109_p11, %p4103_p8 }
  0x8f   :  { %4113 = shalt.err (!%p4110_p12)
}
  0x90   :  { %s4963_s14 = sld [smem:[#allocation48_spill]]  ;;  %s4333_s4 = smov [#allocation10]  }
  0x91   :  { %s93_s10 = sshll.u32 %s4333_s4, 4  ;;  %s4334_s30 = smov [#allocation13]   ;;  %s94_s10 = int_to_ptr.vmem [resolvable:$true] %s93_s10 }
  0x92   :  { %s113_s17 = sshll.u32 %s4334_s30, 4  ;;  %s4122_s2 = scalar_lea.vmem %s94_s10, 16  ;;  %s114_s17 = int_to_ptr.vmem [resolvable:$true] %s113_s17 }
  0x93   :  { %p4123_p13 = scmp.ne.s32.totalorder %s94_s10, %s4122_s2  ;;  %s4126_s5 = scalar_lea.vmem %s94_s10, 32 }
  0x94   :  { %p4127_p0 = scmp.lt.s32.totalorder %s94_s10, %s94_s10  ;;  %p4128_p1 = scmp.lt.s32.totalorder %s4126_s5, %s4122_s2 }
  0x96   :  { %74 = dma.hbm_to_vmem [thread:$0]  %s4963_s14, 16, %s72_s12, [#allocation6]  }
  0x97   :  { %p4129_p2 = por %p4128_p1, %p4127_p0 }
  0x99   :  { %p4130_p3 = pnand %p4129_p2, %p4123_p13 }
  0x9b   :  { %4133 = shalt.err (!%p4130_p3)
}
  0x9c   :  { %s4964_s7 = sld [smem:[#allocation50_spill]]  ;;  %s4142_s3 = scalar_lea.vmem %s114_s17, 16 }
  0x9d   :  { %p4143_p4 = scmp.ne.s32.totalorder %s114_s17, %s4142_s3  ;;  %s4146_s12 = scalar_lea.vmem %s114_s17, 32 }
  0x9e   :  { %p4147_p5 = scmp.lt.s32.totalorder %s114_s17, %s114_s17  ;;  %p4148_p6 = scmp.lt.s32.totalorder %s4146_s12, %s4142_s3 }
  0xa0   :  { %p4149_p7 = por %p4148_p6, %p4147_p5 }
  0xa2   :  { %96 = dma.hbm_to_vmem [thread:$0]  %s4964_s7, 16, %s94_s10, [#allocation9]  }
  0xa3   :  { %p4150_p8 = pnand %p4149_p7, %p4143_p4 }
  0xa5   :  { %4153 = shalt.err (!%p4150_p8)
}
  0xa6   :  { %s4965_s6 = sld [smem:[#allocation52_spill]]  ;;  %s4335_s1 = smov [#allocation16]  }
  0xa7   :  { %s136_s8 = sshll.u32 %s4335_s1, 4  ;;  %s4336_s22 = smov [#allocation19]   ;;  %s137_s8 = int_to_ptr.vmem [resolvable:$true] %s136_s8 }
  0xa8   :  { %s160_s27 = sshll.u32 %s4336_s22, 4  ;;  %s4162_s9 = scalar_lea.vmem %s137_s8, 8192  ;;  %s161_s27 = int_to_ptr.vmem [resolvable:$true] %s160_s27 }
  0xa9   :  { %p4163_p9 = scmp.ne.s32.totalorder %s137_s8, %s4162_s9  ;;  %p4167_p10 = scmp.lt.s32.totalorder %s137_s8, %s137_s8 }
  0xaa   :  { %p4168_p11 = scmp.lt.s32.totalorder %s4162_s9, %s4162_s9 }
  0xac   :  { %116 = dma.hbm_to_vmem [thread:$0]  %s4965_s6, 16, %s114_s17, [#allocation12]  }
  0xad   :  { %p4169_p12 = por %p4168_p11, %p4167_p10 }
  0xaf   :  { %p4170_p13 = pnand %p4169_p12, %p4163_p9 }
  0xb1   :  { %4173 = shalt.err (!%p4170_p13)
}
  0xb2   :  { %s4966_s14 = smov 64   ;;  %s4182_s30 = scalar_lea.vmem %s161_s27, 1024 }
  0xb3   :  { %142 = dma.hbm_to_vmem [thread:$0]  %s4930_s11, 8192, %s137_s8, [#allocation15], %s4966_s14, %s4966_s14, %s4319_s28  }
  0xb4   :  { %p4183_p0 = scmp.ne.s32.totalorder %s161_s27, %s4182_s30  ;;  %p4187_p1 = scmp.lt.s32.totalorder %s161_s27, %s161_s27 }
  0xb5   :  { %p4188_p2 = scmp.lt.s32.totalorder %s4182_s30, %s4182_s30 }
  0xb7   :  { %p4189_p3 = por %p4188_p2, %p4187_p1 }
  0xb9   :  { %p4190_p4 = pnand %p4189_p3, %p4183_p0 }
  0xbb   :  { %4193 = shalt.err (!%p4190_p4)
}
  0xbc   :  { %166 = dma.hbm_to_vmem [thread:$0]  %s4932_s13, 1024, %s161_s27, [#allocation18], %s4966_s14, %s4966_s14, %s4319_s28  }
  0xbd   :  { %s4337_s5 = smov [#allocation22]   ;;  %s4338_s29 = smov [#allocation25]  }
  0xbe   :  { %s185_s0 = sshll.u32 %s4337_s5, 4  ;;  %s205_s11 = sshll.u32 %s4338_s29, 4  ;;  %s186_s0 = int_to_ptr.vmem [resolvable:$true] %s185_s0  ;;  %s206_s11 = int_to_ptr.vmem [resolvable:$true] %s205_s11 }
  0xbf   :  { %s4202_s7 = scalar_lea.vmem %s186_s0, 16  ;;  %s4206_s3 = scalar_lea.vmem %s186_s0, 32 }
  0xc0   :  { %p4203_p5 = scmp.ne.s32.totalorder %s186_s0, %s4202_s7  ;;  %p4207_p6 = scmp.lt.s32.totalorder %s186_s0, %s186_s0 }
  0xc1   :  { %p4208_p7 = scmp.lt.s32.totalorder %s4206_s3, %s4202_s7 }
  0xc3   :  { %p4209_p8 = por %p4208_p7, %p4207_p6 }
  0xc5   :  { %p4210_p9 = pnand %p4209_p8, %p4203_p5 }
  0xc7   :  { %4213 = shalt.err (!%p4210_p9)
}
  0xc8   :  { %188 = dma.hbm_to_vmem [thread:$0]  %s4935_s16, 16, %s186_s0, [#allocation21]  }
  0xc9   :  { %s4222_s26 = scalar_lea.vmem %s206_s11, 16  ;;  %s4226_s13 = scalar_lea.vmem %s206_s11, 32 }
  0xca   :  { %p4223_p10 = scmp.ne.s32.totalorder %s206_s11, %s4222_s26  ;;  %p4227_p11 = scmp.lt.s32.totalorder %s206_s11, %s206_s11 }
  0xcb   :  { %p4228_p12 = scmp.lt.s32.totalorder %s4226_s13, %s4222_s26 }
  0xcd   :  { %p4229_p13 = por %p4228_p12, %p4227_p11 }
  0xcf   :  { %p4230_p0 = pnand %p4229_p13, %p4223_p10 }
  0xd1   :  { %4233 = shalt.err (!%p4230_p0)
}
  0xd2   :  { %208 = dma.hbm_to_vmem [thread:$0]  %s4937_s18, 16, %s206_s11, [#allocation24]  }
  0xd3   :  { %s4339_s1 = smov [#allocation28]   ;;  %s4340_s22 = smov [#allocation31]  }
  0xd4   :  { %s227_s8 = sshll.u32 %s4339_s1, 4  ;;  %s249_s27 = sshll.u32 %s4340_s22, 4  ;;  %s228_s8 = int_to_ptr.vmem [resolvable:$true] %s227_s8  ;;  %s250_s27 = int_to_ptr.vmem [resolvable:$true] %s249_s27 }
  0xd5   :  { %s4242_s9 = scalar_lea.vmem %s228_s8, 16  ;;  %s4246_s16 = scalar_lea.vmem %s228_s8, 32 }
  0xd6   :  { %p4243_p1 = scmp.ne.s32.totalorder %s228_s8, %s4242_s9  ;;  %p4247_p2 = scmp.lt.s32.totalorder %s228_s8, %s228_s8 }
  0xd7   :  { %p4248_p3 = scmp.lt.s32.totalorder %s4246_s16, %s4242_s9 }
  0xd9   :  { %p4249_p4 = por %p4248_p3, %p4247_p2 }
  0xdb   :  { %p4250_p5 = pnand %p4249_p4, %p4243_p1 }
  0xdd   :  { %4253 = shalt.err (!%p4250_p5)
}
  0xde   :  { %230 = dma.hbm_to_vmem [thread:$0]  %s4940_s21, 16, %s228_s8, [#allocation27]  }
  0xdf   :  { %s4262_s10 = scalar_lea.vmem %s250_s27, 16  ;;  %s4266_s18 = scalar_lea.vmem %s250_s27, 32 }
  0xe0   :  { %p4263_p6 = scmp.ne.s32.totalorder %s250_s27, %s4262_s10  ;;  %p4267_p7 = scmp.lt.s32.totalorder %s250_s27, %s250_s27 }
  0xe1   :  { %p4268_p8 = scmp.lt.s32.totalorder %s4266_s18, %s4262_s10 }
  0xe3   :  { %p4269_p9 = por %p4268_p8, %p4267_p7 }
  0xe5   :  { %p4270_p10 = pnand %p4269_p9, %p4263_p6 }
  0xe7   :  { %4273 = shalt.err (!%p4270_p10)
}
  0xe8   :  { %252 = dma.hbm_to_vmem [thread:$0]  %s4943_s24, 16, %s250_s27, [#allocation30]  }
  0xe9   :  { %4294 = dma.done.wait [#allocation3], 16  }
  0xea   :  { %4295 = vsyncadd [#allocation3], 4294967280 }
  0xeb   :  { %4296 = dma.done.wait [#allocation6], 32  }
  0xec   :  { %4297 = vsyncadd [#allocation6], 4294967264 }
  0xed   :  { %4298 = dma.done.wait [#allocation9], 528  }
  0xee   :  { %4299 = vsyncadd [#allocation9], 4294966768 }
  0xef   :  { %4300 = dma.done.wait [#allocation12], 32  }
  0xf0   :  { %4301 = vsyncadd [#allocation12], 4294967264 }
  0xf1   :  { %4302 = dma.done.wait [#allocation15], 16384  }
  0xf2   :  { %4303 = vsyncadd [#allocation15], 4294950912 }
  0xf3   :  { %4304 = dma.done.wait [#allocation18], 2048  }
  0xf4   :  { %4305 = vsyncadd [#allocation18], 4294965248 }
  0xf5   :  { %4306 = dma.done.wait [#allocation21], 32  }
  0xf6   :  { %4307 = vsyncadd [#allocation21], 4294967264 }
  0xf7   :  { %4308 = dma.done.wait [#allocation24], 32  }
  0xf8   :  { %4309 = vsyncadd [#allocation24], 4294967264 }
  0xf9   :  { %4310 = dma.done.wait [#allocation27], 32  }
  0xfa   :  { %4311 = vsyncadd [#allocation27], 4294967264 }
  0xfb   :  { %4312 = dma.done.wait [#allocation30], 32  }
  0xfc   :  { %4313 = vsyncadd [#allocation30], 4294967264  ;;  %v4341_v0 = vmov 0.0   ;;  %vm4342_vm0 = vmmov 0   ;;  %vm384_vm1 = vcmask 1041408   ;;  %s4967_s2 = sld [smem:[#allocation45_spill]] }
  0xfd   :  { %3421 = vmatprep.subr.bf16.mxu0 %v4341_v0  ;;  %3437 = vmatprep.mubr.msk.bf16.mxu0 %vm4342_vm0, %v4341_v0  ;;  %vm380_vm2 = vcmask 949248   ;;  %s4968_s9 = sld [smem:[#allocation44_spill]]  ;;  %v2997_v12 = vld [vmem:[#allocation2] ss:$0 sm:$0xff]  ;;  %vm430_vm3 = vcmask 523264   ;;  %v3631_v25 = vld [vmem:[#allocation8 + $0x10] sm:$0xff]  }
  0xfe   :  { %3441 = vmatprep.subr.bf16.mxu1 %v4341_v0  ;;  %3449 = vmatprep.mubr.msk.bf16.mxu1 %vm4342_vm0, %v4341_v0  ;;  %v3630_v24 = vld [vmem:[#allocation8 + $0x18] sm:$0xff]   ;;  %v3632_v26 = vld [vmem:[#allocation8 + $0x8] sm:$0xff]   ;;  %v3633_v27 = vld [vmem:[#allocation8] sm:$0xff]   ;;  %s4969_s4 = sld [smem:[#allocation53_spill]]  ;;  %vm2870_vm4 = vcmask 261120   ;;  %vm2971_vm5 = vcmask 64512  }
  0xff   :  { %3442 = vmatpush3.bf16.msra.mxu1 %v3630_v24  ;;  %v3007_v32 = vld [vmem:[#allocation5] ss:$0 sm:$0xff]  ;;  %v3008_v34 = vld [vmem:[#allocation7] ss:$0 sm:$0xff]  ;;  %v3009_v43 = vld [vmem:[#allocation10] ss:$0 sm:$0xff] }
 0x100   :  { %3443 = vmatprep.subr.bf16.mxu1 %v4341_v0 }
 0x102   :  { %v3622_v1 = vld [vmem:[%s4967_s2 + $0x38] ss:$0 sps:$4 sm:$0x33]   ;;  %v3623_v3 = vld [vmem:[%s4967_s2 + $0x30] sm:$0xff]   ;;  %v3624_v4 = vld [vmem:[%s4967_s2 + $0x28] sm:$0xff]  }
 0x103   :  { %v386_v2 = vsel %vm384_vm1, %v3622_v1, 0  ;;  %v3625_v5 = vld [vmem:[%s4967_s2 + $0x20] sm:$0xff]   ;;  %v3626_v6 = vld [vmem:[%s4967_s2 + $0x18] sm:$0xff]   ;;  %v3627_v7 = vld [vmem:[%s4967_s2 + $0x10] sm:$0xff]   ;;  %3444 = vmatpush3.bf16.msra.mxu1 %v3631_v25 }
 0x104   :  { %3422 = vmatpush3.bf16.msra.mxu0 %v386_v2  ;;  %v3628_v8 = vld [vmem:[%s4967_s2 + $0x8] sm:$0xff]   ;;  %v3629_v9 = vld [vmem:[%s4967_s2] sm:$0xff]   ;;  %3445 = vmatprep.subr.bf16.mxu1 %v4341_v0  ;;  %v3634_v49 = vld [vmem:[%s4969_s4 + $0x38] sm:$0xff]  }
 0x105   :  { %3423 = vmatprep.subr.bf16.mxu0 %v4341_v0  ;;  %v311_v10 = vld [vmem:[%s4968_s9] sm:$0xff]  ;;  %v3635_v50 = vld [vmem:[%s4969_s4 + $0x30] sm:$0xff]   ;;  %v3636_v55 = vld [vmem:[%s4969_s4 + $0x28] sm:$0xff]  }
 0x106   :  { %v327_v11 = vpack.c.bf16 %v311_v10, %v311_v10  ;;  %v3637_v56 = vld [vmem:[%s4969_s4 + $0x20] sm:$0xff]   ;;  %v3638_v57 = vld [vmem:[%s4969_s4 + $0x18] sm:$0xff]   ;;  %v3639_v58 = vld [vmem:[%s4969_s4 + $0x10] sm:$0xff]  }
 0x107   :  { %3446 = vmatpush3.bf16.msra.mxu1 %v3632_v26  ;;  %v3640_v59 = vld [vmem:[%s4969_s4 + $0x8] sm:$0xff]   ;;  %v3641_v60 = vld [vmem:[%s4969_s4] sm:$0xff]  }
 0x108   :  { %3424 = vmatpush3.bf16.msra.mxu0 %v3623_v3  ;;  %3447 = vmatprep.subr.bf16.mxu1 %v4341_v0  ;;  %v3015_v2 = vld [vmem:[#allocation11] ss:$0 sm:$0xff] }
 0x109   :  { %3425 = vmatprep.subr.bf16.mxu0 %v4341_v0 }
 0x10b   :  { %3448 = vmatpush3.bf16.msra.mxu1 %v3633_v27  ;;  %v3650_v27 = vld [vmem:[#allocation14 + $0x54] ss:$8 sps:$4 sm:$0xff]  }
 0x10c   :  { %3426 = vmatpush3.bf16.msra.mxu0 %v3624_v4  ;;  %3453 = vmatprep.subr.bf16.mxu1 %v4341_v0  ;;  %v3016_v4 = vld [vmem:[#allocation13] ss:$0 sm:$0xff] }
 0x10d   :  { %3427 = vmatprep.subr.bf16.mxu0 %v4341_v0 }
 0x110   :  { %3428 = vmatpush3.bf16.msra.mxu0 %v3625_v5 }
 0x111   :  { %3429 = vmatprep.subr.bf16.mxu0 %v4341_v0 }
 0x114   :  { %3430 = vmatpush3.bf16.msra.mxu0 %v3626_v6 }
 0x115   :  { %3431 = vmatprep.subr.bf16.mxu0 %v4341_v0 }
 0x118   :  { %3432 = vmatpush3.bf16.msra.mxu0 %v3627_v7 }
 0x119   :  { %3433 = vmatprep.subr.bf16.mxu0 %v4341_v0 }
 0x11c   :  { %3434 = vmatpush3.bf16.msra.mxu0 %v3628_v8  ;;  %v594_v8 = vlaneseq }
 0x11d   :  { %3435 = vmatprep.subr.bf16.mxu0 %v4341_v0 }
 0x120   :  { %3436 = vmatpush3.bf16.msra.mxu0 %v3629_v9  ;;  %v4621_v9 = vshrl.u32 %v594_v8, 7 }
 0x122   :  { %v4624_v10 = vsub.s32 0, %v4621_v9 }
 0x123   :  { %3438 = vmatmul.mubr.msk.bf16.vlgmr.msra.gmra.mxu0 %vm380_vm2, %v327_v11  ;;  %v4626_v11 = vld [vmem:[#allocation17] sm:$0xff] }
 0x1e3   :  { %v422_v13 = vpop.f32.mrf.mxu0 }
 0x1e4   :  { %v423_v14 = vadd.f32 %v2997_v12, %v422_v13  ;;  %v597_v12 = vrot.slane %v4626_v11, %v4624_v10 }
 0x1e5   :  { %v3439_v15 = vpop.f32.mrf.mxu0 }
 0x1e6   :  { %v431_v16 = vsel %vm430_vm3, %v423_v14, 0.0 }
 0x1e7   :  { %432 = vadd.xlane.f32.xlu0 %v431_v16  ;;  %v425_v17 = vpop.f32.mrf.mxu0 }
 0x1e9   :  { %v3440_v18 = vpop.f32.mrf.mxu0 }
 0x270   :  { %v433_v19 = vpop.xlane.xlu0 %432 }
 0x271   :  { %v435_v20 = vmul.f32 0.015625, %v433_v19  ;;  %v3642_v19 = vld [vmem:[#allocation14 + $0x70] ss:$8 sps:$4 sm:$0xff]  }
 0x273   :  { %v436_v21 = vsub.f32 %v423_v14, %v435_v20  ;;  %v3644_v20 = vld [vmem:[#allocation14 + $0x74] ss:$8 sps:$4 sm:$0xff]  }
 0x274   :  { %813 = vmatprep.subr.bf16.mxu0 %v3644_v20 }
 0x275   :  { %v437_v22 = vmul.f32 %v436_v21, %v436_v21  ;;  %814 = vmatpush1.bf16.msra.mxu0 %v3642_v19 }
 0x277   :  { %v438_v23 = vsel %vm430_vm3, %v437_v22, 0.0  ;;  %v3645_v22 = vld [vmem:[#allocation14 + $0x60] ss:$8 sps:$4 sm:$0xff]  }
 0x278   :  { %439 = vadd.xlane.f32.xlu0 %v438_v23 }
 0x301   :  { %v440_v28 = vpop.xlane.xlu0 %439 }
 0x302   :  { %v441_v29 = vmul.f32 0.015625, %v440_v28  ;;  %v3648_v28 = vld [vmem:[#allocation14 + $0x50] ss:$8 sps:$4 sm:$0xff]  }
 0x304   :  { %v442_v30 = vadd.f32 1e-05, %v441_v29  ;;  %v3651_v29 = vld [vmem:[#allocation14 + $0x40] ss:$8 sps:$4 sm:$0xff]  }
 0x306   :  { %3848 = vrsqrt.f32 %v442_v30  ;;  %v3653_v30 = vld [vmem:[#allocation14 + $0x44] ss:$8 sps:$4 sm:$0xff]  }
 0x313   :  { %v3849_v31 = vpop.eup %3848 }
 0x314   :  { %v444_v33 = vmul.f32 %v3849_v31, %v436_v21  ;;  %v3647_v21 = vld [vmem:[#allocation14 + $0x64] ss:$8 sps:$4 sm:$0xff]   ;;  %v3656_v31 = vld [vmem:[#allocation14 + $0x34] ss:$8 sps:$4 sm:$0xff]  }
 0x315   :  { %815 = vmatprep.subr.bf16.mxu0 %v3647_v21 }
 0x316   :  { %v451_v35 = vmul.f32 %v3007_v32, %v444_v33  ;;  %816 = vmatpush1.bf16.msra.mxu0 %v3645_v22  ;;  %v3654_v32 = vld [vmem:[#allocation14 + $0x30] ss:$8 sps:$4 sm:$0xff]   ;;  %v3659_v33 = vld [vmem:[#allocation14 + $0x24] ss:$8 sps:$4 sm:$0xff]  }
 0x317   :  { %817 = vmatprep.subr.bf16.mxu0 %v3650_v27 }
 0x318   :  { %v458_v36 = vadd.f32 %v3008_v34, %v451_v35  ;;  %v4343_v34 = vmov 0   ;;  %v3657_v35 = vld [vmem:[#allocation14 + $0x20] ss:$8 sps:$4 sm:$0xff]  }
 0x319   :  { %845 = vmatprep.mubr.bf16.mxu0 %v4343_v34 }
 0x31a   :  { %v460_v37 = vmul.f32 0.70710677, %v458_v36  ;;  %v459_v39 = vmul.f32 0.5, %v458_v36  ;;  %818 = vmatpush1.bf16.msra.mxu0 %v3648_v28  ;;  %v3662_v36 = vld [vmem:[#allocation14 + $0x14] ss:$8 sps:$4 sm:$0xff]  }
 0x31b   :  { %819 = vmatprep.subr.bf16.mxu0 %v3653_v30  ;;  %v4656_v30 = vsub.s32 4, %v4621_v9 }
 0x31c   :  { %3850 = verf.f32 %v460_v37  ;;  %v3660_v37 = vld [vmem:[#allocation14 + $0x10] ss:$8 sps:$4 sm:$0xff]  }
 0x31e   :  { %820 = vmatpush1.bf16.msra.mxu0 %v3651_v29 }
 0x31f   :  { %821 = vmatprep.subr.bf16.mxu0 %v3656_v31 }
 0x322   :  { %822 = vmatpush1.bf16.msra.mxu0 %v3654_v32  ;;  %v901_v32 = vrot.slane %v4626_v11, %v4656_v30 }
 0x323   :  { %823 = vmatprep.subr.bf16.mxu0 %v3659_v33 }
 0x326   :  { %824 = vmatpush1.bf16.msra.mxu0 %v3657_v35 }
 0x327   :  { %825 = vmatprep.subr.bf16.mxu0 %v3662_v36 }
 0x329   :  { %v3851_v38 = vpop.eup %3850 }
 0x32a   :  { %v462_v40 = vadd.f32 1.0, %v3851_v38  ;;  %v3665_v38 = vld [vmem:[#allocation14 + $0x4] ss:$8 sps:$4 sm:$0xff]   ;;  %826 = vmatpush1.bf16.msra.mxu0 %v3660_v37 }
 0x32b   :  { %827 = vmatprep.subr.bf16.mxu0 %v3665_v38 }
 0x32c   :  { %v463_v41 = vmul.f32 %v462_v40, %v459_v39  ;;  %v3663_v39 = vld [vmem:[#allocation14] ss:$8 sps:$4 sm:$0xff]   ;;  %v3666_v40 = vld [vmem:[#allocation16 + $0x78] sm:$0xff]  }
 0x32e   :  { %v472_v42 = vpack.c.bf16 %v463_v41, %v463_v41  ;;  %828 = vmatpush1.bf16.msra.mxu0 %v3663_v39  ;;  %v3667_v41 = vld [vmem:[#allocation16 + $0x38] sm:$0xff]  }
 0x32f   :  { %3473 = vmatprep.subr.bf16.mxu0 %v4341_v0 }
 0x330   :  { %3450 = vmatmul.mubr.msk.bf16.vlgmr.msra.gmra.mxu1 %vm430_vm3, %v472_v42 }
 0x331   :  { %3469 = vmatprep.mubr.msk.bf16.mxu1 %vm4342_vm0, %v4341_v0  ;;  %3454 = vmatpush3.bf16.msra.mxu1 %v3634_v49 }
 0x332   :  { %3455 = vmatprep.subr.bf16.mxu1 %v4341_v0 }
 0x335   :  { %3456 = vmatpush3.bf16.msra.mxu1 %v3635_v50 }
 0x336   :  { %3457 = vmatprep.subr.bf16.mxu1 %v4341_v0 }
 0x339   :  { %3458 = vmatpush3.bf16.msra.mxu1 %v3636_v55  ;;  %v3669_v55 = vld [vmem:[#allocation16 + $0x30] sm:$0xff]  }
 0x33a   :  { %3459 = vmatprep.subr.bf16.mxu1 %v4341_v0 }
 0x33d   :  { %3460 = vmatpush3.bf16.msra.mxu1 %v3637_v56  ;;  %v3670_v56 = vld [vmem:[#allocation16 + $0x68] sm:$0xff]  }
 0x33e   :  { %3461 = vmatprep.subr.bf16.mxu1 %v4341_v0 }
 0x341   :  { %3462 = vmatpush3.bf16.msra.mxu1 %v3638_v57  ;;  %v3671_v57 = vld [vmem:[#allocation16 + $0x28] sm:$0xff]  }
 0x342   :  { %3463 = vmatprep.subr.bf16.mxu1 %v4341_v0 }
 0x345   :  { %3464 = vmatpush3.bf16.msra.mxu1 %v3639_v58  ;;  %v3672_v58 = vld [vmem:[#allocation16 + $0x60] sm:$0xff]  }
 0x346   :  { %3465 = vmatprep.subr.bf16.mxu1 %v4341_v0 }
 0x349   :  { %3466 = vmatpush3.bf16.msra.mxu1 %v3640_v59  ;;  %v3673_v59 = vld [vmem:[#allocation16 + $0x20] sm:$0xff]  }
 0x34a   :  { %3467 = vmatprep.subr.bf16.mxu1 %v4341_v0 }
 0x34d   :  { %3468 = vmatpush3.bf16.msra.mxu1 %v3641_v60  ;;  %v3674_v60 = vld [vmem:[#allocation16 + $0x58] sm:$0xff]  }
 0x34e   :  { %3280 = vmatprep.subr.bf16.mxu1 %v3666_v40  ;;  %v3682_v40 = vld [vmem:[%s4969_s4 + $0x78] sm:$0xff]  }
 0x3f0   :  { %v541_v44 = vpop.f32.mrf.mxu1 }
 0x3f1   :  { %v542_v45 = vadd.f32 %v3009_v43, %v541_v44 }
 0x3f2   :  { %v3451_v46 = vpop.f32.mrf.mxu1 }
 0x3f3   :  { %549 = vadd.xlane.f32.xlu1 %v542_v45  ;;  %v4636_v46 = vsub.s32 2, %v4621_v9 }
 0x3f4   :  { %v544_v47 = vpop.f32.mrf.mxu1 }
 0x3f5   :  { %v706_v50 = vrot.slane %v4626_v11, %v4636_v46 }
 0x3f6   :  { %v3452_v48 = vpop.f32.mrf.mxu1 }
 0x47c   :  { %v550_v51 = vpop.xlane.xlu1 %549 }
 0x47d   :  { %v552_v52 = vmul.f32 0.0078125, %v550_v51 }
 0x47f   :  { %v553_v53 = vsub.f32 %v542_v45, %v552_v52  ;;  %v4633_v45 = vsub.s32 1, %v4621_v9 }
 0x481   :  { %v554_v54 = vmul.f32 %v553_v53, %v553_v53  ;;  %v701_v47 = vrot.slane %v4626_v11, %v4633_v45 }
 0x483   :  { %555 = vadd.xlane.f32.xlu1 %v554_v54  ;;  %v3668_v54 = vld [vmem:[#allocation16 + $0x70] sm:$0xff]  }
 0x50c   :  { %v556_v61 = vpop.xlane.xlu1 %555 }
 0x50d   :  { %v557_v62 = vmul.f32 0.0078125, %v556_v61  ;;  %v3675_v61 = vld [vmem:[#allocation16 + $0x18] sm:$0xff]  }
 0x50f   :  { %v558_v63 = vadd.f32 1e-05, %v557_v62  ;;  %v3676_v62 = vld [vmem:[#allocation16 + $0x50] sm:$0xff]  }
 0x511   :  { %3852 = vrsqrt.f32 %v558_v63  ;;  %v3677_v63 = vld [vmem:[#allocation16 + $0x10] sm:$0xff]  }
 0x51e   :  { %v3853_v1 = vpop.eup %3852 }
 0x51f   :  { %v560_v3 = vmul.f32 %v3853_v1, %v553_v53  ;;  %v3678_v1 = vld [vmem:[#allocation16 + $0x48] sm:$0xff]  }
 0x521   :  { %v567_v5 = vmul.f32 %v3015_v2, %v560_v3  ;;  %v3679_v2 = vld [vmem:[#allocation16 + $0x8] sm:$0xff]   ;;  %v3680_v3 = vld [vmem:[#allocation16 + $0x40] sm:$0xff]  }
 0x523   :  { %v574_v6 = vadd.f32 %v3016_v4, %v567_v5  ;;  %v3681_v4 = vld [vmem:[#allocation16] sm:$0xff]   ;;  %v4649_v5 = vsub.s32 3, %v4621_v9 }
 0x525   :  { %v593_v7 = vpack.c.bf16 %v574_v6, %v574_v6 }
 0x527   :  { %3470 = vmatmul.mubr.bf16.vlgmr.msra.gmra.mxu1 %v593_v7  ;;  %v728_v7 = vrot.slane %v4626_v11, %v4649_v5 }
 0x528   :  { %3281 = vmatpush3.bf16.msra.mxu1 %v3667_v41  ;;  %v3683_v41 = vld [vmem:[%s4969_s4 + $0x70] sm:$0xff]  }
 0x529   :  { %3282 = vmatprep.subr.bf16.mxu1 %v3668_v54 }
 0x52c   :  { %3283 = vmatpush3.bf16.msra.mxu1 %v3669_v55 }
 0x52d   :  { %3284 = vmatprep.subr.bf16.mxu1 %v3670_v56 }
 0x530   :  { %3285 = vmatpush3.bf16.msra.mxu1 %v3671_v57  ;;  %v4693_v57 = vsub.s32 5, %v4621_v9 }
 0x531   :  { %3286 = vmatprep.subr.bf16.mxu1 %v3672_v58  ;;  %v4696_v58 = vsub.s32 6, %v4621_v9 }
 0x534   :  { %3287 = vmatpush3.bf16.msra.mxu1 %v3673_v59  ;;  %v1053_v59 = vrot.slane %v4626_v11, %v4693_v57 }
 0x535   :  { %3288 = vmatprep.subr.bf16.mxu1 %v3674_v60 }
 0x538   :  { %3289 = vmatpush3.bf16.msra.mxu1 %v3675_v61 }
 0x539   :  { %3290 = vmatprep.subr.bf16.mxu1 %v3676_v62  ;;  %v1058_v62 = vrot.slane %v4626_v11, %v4696_v58  ;;  %v3693_v11 = vld [vmem:[#allocation14 + $0xe0] ss:$8 sps:$4 sm:$0xff]  }
 0x53c   :  { %3291 = vmatpush3.bf16.msra.mxu1 %v3677_v63 }
 0x53d   :  { %3292 = vmatprep.subr.bf16.mxu1 %v3678_v1 }
 0x540   :  { %3293 = vmatpush3.bf16.msra.mxu1 %v3679_v2 }
 0x541   :  { %3294 = vmatprep.subr.bf16.mxu1 %v3680_v3  ;;  %v4702_v3 = vld [vmem:[#allocation17 + $0x10] sm:$0xff] }
 0x544   :  { %3295 = vmatpush3.bf16.msra.mxu1 %v3681_v4  ;;  %v1084_v4 = vrot.slane %v4702_v3, %v4624_v10 }
 0x5e7   :  { %v680_v13 = vpop.f32.mrf.mxu1 }
 0x5e8   :  { %v681_v14 = vadd.f32 %v680_v13, %v597_v12 }
 0x5e9   :  { %v3471_v15 = vpop.f32.mrf.mxu1 }
 0x5ea   :  { %v686_v16 = vadd.f32 %v681_v14, %v574_v6  ;;  %v576_v6 = vld [vmem:[#allocation17 + $0x8] sm:$0xff] }
 0x5eb   :  { %v683_v17 = vpop.f32.mrf.mxu1  ;;  %v732_v8 = vrot.slane %v576_v6, %v4649_v5 }
 0x5ec   :  { %687 = vadd.xlane.f32.xlu0 %v686_v16 }
 0x5ed   :  { %v3472_v18 = vpop.f32.mrf.mxu1 }
 0x675   :  { %v688_v23 = vpop.xlane.xlu0 %687 }
 0x676   :  { %v689_v24 = vmul.f32 0.0078125, %v688_v23 }
 0x678   :  { %v690_v25 = vsub.f32 %v686_v16, %v689_v24 }
 0x67a   :  { %v691_v26 = vmul.f32 %v690_v25, %v690_v25 }
 0x67c   :  { %692 = vadd.xlane.f32.xlu1 %v691_v26 }
 0x705   :  { %v693_v42 = vpop.xlane.xlu1 %692 }
 0x706   :  { %v694_v43 = vmul.f32 0.0078125, %v693_v42 }
 0x708   :  { %v695_v44 = vadd.f32 1e-05, %v694_v43 }
 0x70a   :  { %3854 = vrsqrt.f32 %v695_v44 }
 0x717   :  { %v3855_v48 = vpop.eup %3854 }
 0x718   :  { %v697_v49 = vmul.f32 %v3855_v48, %v690_v25  ;;  %v3684_v48 = vld [vmem:[%s4969_s4 + $0x68] sm:$0xff]  }
 0x71a   :  { %v702_v51 = vmul.f32 %v701_v47, %v697_v49  ;;  %v3685_v49 = vld [vmem:[%s4969_s4 + $0x60] sm:$0xff]  }
 0x71c   :  { %v4642_v52 = vadd.f32 %v706_v50, %v702_v51  ;;  %v3686_v50 = vld [vmem:[%s4969_s4 + $0x58] sm:$0xff]   ;;  %v3687_v51 = vld [vmem:[%s4969_s4 + $0x50] sm:$0xff]  }
 0x71e   :  { %v724_v53 = vpack.c.bf16 %v4642_v52, %v4642_v52 }
 0x720   :  { %846 = vmatmul.mubr.bf16.vlgmr.msra.gmra.mxu0 %v724_v53  ;;  %v3689_v53 = vld [vmem:[%s4969_s4 + $0x40] sm:$0xff]  }
 0x721   :  { %3489 = vmatprep.mubr.msk.bf16.mxu0 %vm4342_vm0, %v4341_v0  ;;  %3474 = vmatpush3.bf16.msra.mxu0 %v3682_v40  ;;  %v1188_v40 = vrot.slane %v4702_v3, %v4633_v45 }
 0x722   :  { %3475 = vmatprep.subr.bf16.mxu0 %v4341_v0 }
 0x725   :  { %3476 = vmatpush3.bf16.msra.mxu0 %v3683_v41 }
 0x726   :  { %3477 = vmatprep.subr.bf16.mxu0 %v4341_v0 }
 0x729   :  { %3478 = vmatpush3.bf16.msra.mxu0 %v3684_v48 }
 0x72a   :  { %3479 = vmatprep.subr.bf16.mxu0 %v4341_v0 }
 0x72d   :  { %3480 = vmatpush3.bf16.msra.mxu0 %v3685_v49  ;;  %v3716_v49 = vld [vmem:[#allocation16 + $0xf0] sm:$0xff]  }
 0x72e   :  { %3481 = vmatprep.subr.bf16.mxu0 %v4341_v0 }
 0x731   :  { %3482 = vmatpush3.bf16.msra.mxu0 %v3686_v50  ;;  %v3717_v50 = vld [vmem:[#allocation16 + $0xb0] sm:$0xff]  }
 0x732   :  { %3483 = vmatprep.subr.bf16.mxu0 %v4341_v0 }
 0x735   :  { %3484 = vmatpush3.bf16.msra.mxu0 %v3687_v51  ;;  %v3718_v51 = vld [vmem:[#allocation16 + $0xe8] sm:$0xff]  }
 0x736   :  { %3485 = vmatprep.subr.bf16.mxu0 %v4341_v0 }
 0x7e0   :  { %v847_v12 = vpop.f32.mrf.mxu0 }
 0x7e1   :  { %v848_v13 = vadd.f32 %v847_v12, %v728_v7 }
 0x7e2   :  { %v849_v14 = vpop.f32.mrf.mxu0 }
 0x7e3   :  { %v856_v15 = vmul.f32 0.70710677, %v848_v13  ;;  %v850_v16 = vadd.f32 %v849_v14, %v732_v8  ;;  %v854_v23 = vmul.f32 0.5, %v848_v13  ;;  %v3690_v14 = vld [vmem:[#allocation14 + $0xf0] ss:$8 sps:$4 sm:$0xff]  }
 0x7e4   :  { %v851_v17 = vpop.f32.mrf.mxu0 }
 0x7e5   :  { %3856 = verf.f32 %v856_v15  ;;  %v857_v18 = vmul.f32 0.70710677, %v850_v16  ;;  %v855_v24 = vmul.f32 0.5, %v850_v16  ;;  %v3692_v15 = vld [vmem:[#allocation14 + $0xf4] ss:$8 sps:$4 sm:$0xff]  }
 0x7e6   :  { %v852_v19 = vpop.f32.mrf.mxu0  ;;  %v3695_v16 = vld [vmem:[#allocation14 + $0xe4] ss:$8 sps:$4 sm:$0xff]   ;;  %1301 = vmatprep.subr.bf16.mxu1 %v3692_v15 }
 0x7e7   :  { %3858 = verf.f32 %v857_v18 }
 0x7f2   :  { %v3857_v20 = vpop.eup %3856 }
 0x7f3   :  { %v860_v21 = vadd.f32 1.0, %v3857_v20 }
 0x7f4   :  { %v3859_v22 = vpop.eup %3858 }
 0x7f5   :  { %v861_v25 = vadd.f32 1.0, %v3859_v22  ;;  %v862_v26 = vmul.f32 %v860_v21, %v854_v23  ;;  %v3698_v21 = vld [vmem:[#allocation14 + $0xd4] ss:$8 sps:$4 sm:$0xff]   ;;  %v3696_v22 = vld [vmem:[#allocation14 + $0xd0] ss:$8 sps:$4 sm:$0xff]  }
 0x7f6   :  { %v3699_v23 = vld [vmem:[#allocation14 + $0xc0] ss:$8 sps:$4 sm:$0xff]  }
 0x7f7   :  { %v863_v27 = vmul.f32 %v861_v25, %v855_v24  ;;  %v896_v29 = vpack.c.bf16 %v862_v26, %v862_v26  ;;  %v3701_v24 = vld [vmem:[#allocation14 + $0xc4] ss:$8 sps:$4 sm:$0xff]   ;;  %v3704_v25 = vld [vmem:[#allocation14 + $0xb4] ss:$8 sps:$4 sm:$0xff]   ;;  %v3702_v26 = vld [vmem:[#allocation14 + $0xb0] ss:$8 sps:$4 sm:$0xff]  }
 0x7f9   :  { %v897_v28 = vpack.c.bf16 %v863_v27, %v863_v27  ;;  %v3707_v27 = vld [vmem:[#allocation14 + $0xa4] ss:$8 sps:$4 sm:$0xff]  }
 0x7fb   :  { %1030 = vmatprep.mubr.bf16.mxu1 %v897_v28  ;;  %v3705_v28 = vld [vmem:[#allocation14 + $0xa0] ss:$8 sps:$4 sm:$0xff]  }
 0x7fc   :  { %1031 = vmatmul.mubr.bf16.vlgmr.msra.gmra.mxu1 %v896_v29  ;;  %v3710_v29 = vld [vmem:[#allocation14 + $0x94] ss:$8 sps:$4 sm:$0xff]  }
 0x7fd   :  { %1333 = vmatprep.mubr.bf16.mxu1 %v4343_v34  ;;  %1302 = vmatpush1.bf16.msra.mxu1 %v3690_v14 }
 0x7fe   :  { %1303 = vmatprep.subr.bf16.mxu1 %v3695_v16 }
 0x801   :  { %1304 = vmatpush1.bf16.msra.mxu1 %v3693_v11 }
 0x802   :  { %1305 = vmatprep.subr.bf16.mxu1 %v3698_v21 }
 0x805   :  { %1306 = vmatpush1.bf16.msra.mxu1 %v3696_v22 }
 0x806   :  { %1307 = vmatprep.subr.bf16.mxu1 %v3701_v24 }
 0x809   :  { %1308 = vmatpush1.bf16.msra.mxu1 %v3699_v23 }
 0x80a   :  { %1309 = vmatprep.subr.bf16.mxu1 %v3704_v25 }
 0x80d   :  { %1310 = vmatpush1.bf16.msra.mxu1 %v3702_v26 }
 0x80e   :  { %1311 = vmatprep.subr.bf16.mxu1 %v3707_v27  ;;  %v1390_v27 = vrot.slane %v4702_v3, %v4656_v30 }
 0x811   :  { %1312 = vmatpush1.bf16.msra.mxu1 %v3705_v28 }
 0x812   :  { %1313 = vmatprep.subr.bf16.mxu1 %v3710_v29 }
 0x8bc   :  { %v3296_v31 = vpop.f32.mrf.mxu1 }
 0x8be   :  { %v3297_v33 = vpop.f32.mrf.mxu1 }
 0x8bf   :  { %v3298_v35 = vadd.f32 %v3297_v33, %v3296_v31  ;;  %v3708_v31 = vld [vmem:[#allocation14 + $0x90] ss:$8 sps:$4 sm:$0xff]   ;;  %v3711_v33 = vld [vmem:[#allocation14 + $0x80] ss:$8 sps:$4 sm:$0xff]  }
 0x8c0   :  { %v3299_v36 = vpop.f32.mrf.mxu1  ;;  %1314 = vmatpush1.bf16.msra.mxu1 %v3708_v31 }
 0x8c1   :  { %v1033_v37 = vadd.f32 %v3298_v35, %v901_v32  ;;  %v3713_v32 = vld [vmem:[#allocation14 + $0x84] ss:$8 sps:$4 sm:$0xff]   ;;  %v3714_v35 = vld [vmem:[#allocation16 + $0xf8] sm:$0xff]  }
 0x8c2   :  { %v3300_v38 = vpop.f32.mrf.mxu1  ;;  %1315 = vmatprep.subr.bf16.mxu1 %v3713_v32  ;;  %v3715_v36 = vld [vmem:[#allocation16 + $0xb8] sm:$0xff]  }
 0x8c3   :  { %v1038_v39 = vadd.f32 %v1033_v37, %v4642_v52  ;;  %v3688_v52 = vld [vmem:[%s4969_s4 + $0x48] sm:$0xff]  }
 0x8c4   :  { %3486 = vmatpush3.bf16.msra.mxu0 %v3688_v52  ;;  %1316 = vmatpush1.bf16.msra.mxu1 %v3711_v33  ;;  %v3719_v52 = vld [vmem:[#allocation16 + $0xa8] sm:$0xff]  }
 0x8c5   :  { %1039 = vadd.xlane.f32.xlu0 %v1038_v39  ;;  %3487 = vmatprep.subr.bf16.mxu0 %v4341_v0 }
 0x8c6   :  { %3493 = vmatprep.subr.bf16.mxu1 %v4341_v0 }
 0x8c8   :  { %3488 = vmatpush3.bf16.msra.mxu0 %v3689_v53  ;;  %v3720_v53 = vld [vmem:[#allocation16 + $0xe0] sm:$0xff]  }
 0x8c9   :  { %3311 = vmatprep.subr.bf16.mxu0 %v3714_v35 }
 0x94e   :  { %v1040_v42 = vpop.xlane.xlu0 %1039 }
 0x94f   :  { %v1041_v43 = vmul.f32 0.0078125, %v1040_v42 }
 0x951   :  { %v1042_v44 = vsub.f32 %v1038_v39, %v1041_v43  ;;  %v1193_v43 = vrot.slane %v4702_v3, %v4636_v46 }
 0x953   :  { %v1043_v47 = vmul.f32 %v1042_v44, %v1042_v44 }
 0x955   :  { %1044 = vadd.xlane.f32.xlu1 %v1043_v47 }
 0x9de   :  { %v1045_v54 = vpop.xlane.xlu1 %1044 }
 0x9df   :  { %v1046_v55 = vmul.f32 0.0078125, %v1045_v54  ;;  %v3721_v54 = vld [vmem:[#allocation16 + $0xa0] sm:$0xff]  }
 0x9e1   :  { %v1047_v56 = vadd.f32 1e-05, %v1046_v55  ;;  %v3722_v55 = vld [vmem:[#allocation16 + $0xd8] sm:$0xff]  }
 0x9e3   :  { %3860 = vrsqrt.f32 %v1047_v56  ;;  %v3723_v56 = vld [vmem:[#allocation16 + $0x98] sm:$0xff]  }
 0x9f0   :  { %v3861_v60 = vpop.eup %3860 }
 0x9f1   :  { %v1049_v61 = vmul.f32 %v3861_v60, %v1042_v44  ;;  %v3725_v60 = vld [vmem:[#allocation16 + $0x90] sm:$0xff]  }
 0x9f3   :  { %v1054_v63 = vmul.f32 %v1053_v59, %v1049_v61  ;;  %v3724_v59 = vld [vmem:[#allocation16 + $0xd0] sm:$0xff]   ;;  %v3726_v61 = vld [vmem:[#allocation16 + $0xc8] sm:$0xff]  }
 0x9f5   :  { %v1059_v1 = vadd.f32 %v1058_v62, %v1054_v63  ;;  %v3727_v62 = vld [vmem:[#allocation16 + $0x88] sm:$0xff]   ;;  %v3728_v63 = vld [vmem:[#allocation16 + $0xc0] sm:$0xff]  }
 0x9f7   :  { %v1080_v2 = vpack.c.bf16 %v1059_v1, %v1059_v1 }
 0x9f9   :  { %3490 = vmatmul.mubr.bf16.vlgmr.msra.gmra.mxu0 %v1080_v2  ;;  %v1062_v2 = vld [vmem:[#allocation17 + $0x18] sm:$0xff] }
 0x9fa   :  { %3312 = vmatpush3.bf16.msra.mxu0 %v3715_v36  ;;  %v3730_v36 = vld [vmem:[%s4969_s4 + $0xb8] sm:$0xff]  }
 0x9fb   :  { %3313 = vmatprep.subr.bf16.mxu0 %v3716_v49  ;;  %v3737_v49 = vld [vmem:[%s4969_s4 + $0x80] sm:$0xff]  }
 0x9fe   :  { %3314 = vmatpush3.bf16.msra.mxu0 %v3717_v50 }
 0x9ff   :  { %3315 = vmatprep.subr.bf16.mxu0 %v3718_v51 }
 0xa02   :  { %3316 = vmatpush3.bf16.msra.mxu0 %v3719_v52 }
 0xa03   :  { %3317 = vmatprep.subr.bf16.mxu0 %v3720_v53  ;;  %v1542_v53 = vrot.slane %v4702_v3, %v4693_v57 }
 0xa06   :  { %3318 = vmatpush3.bf16.msra.mxu0 %v3721_v54 }
 0xa07   :  { %3319 = vmatprep.subr.bf16.mxu0 %v3722_v55 }
 0xa0a   :  { %3320 = vmatpush3.bf16.msra.mxu0 %v3723_v56  ;;  %v1547_v56 = vrot.slane %v4702_v3, %v4696_v58 }
 0xa0b   :  { %3321 = vmatprep.subr.bf16.mxu0 %v3724_v59 }
 0xa0e   :  { %3322 = vmatpush3.bf16.msra.mxu0 %v3725_v60 }
 0xa0f   :  { %3323 = vmatprep.subr.bf16.mxu0 %v3726_v61 }
 0xa12   :  { %3324 = vmatpush3.bf16.msra.mxu0 %v3727_v62  ;;  %v4759_v62 = vld [vmem:[#allocation17 + $0x20] sm:$0xff] }
 0xa13   :  { %3325 = vmatprep.subr.bf16.mxu0 %v3728_v63  ;;  %v1573_v63 = vrot.slane %v4759_v62, %v4624_v10 }
 0xab9   :  { %v1167_v6 = vpop.f32.mrf.mxu0 }
 0xaba   :  { %v1168_v9 = vadd.f32 %v1167_v6, %v1084_v4  ;;  %v1216_v4 = vrot.slane %v4702_v3, %v4649_v5  ;;  %v1220_v6 = vrot.slane %v1062_v2, %v4649_v5  ;;  %v3741_v3 = vld [vmem:[#allocation14 + $0x160] ss:$8 sps:$4 sm:$0xff]  }
 0xabb   :  { %v3491_v7 = vpop.f32.mrf.mxu0 }
 0xabc   :  { %v1173_v8 = vadd.f32 %v1168_v9, %v1059_v1  ;;  %v3729_v1 = vld [vmem:[#allocation16 + $0x80] sm:$0xff]  }
 0xabd   :  { %v1170_v12 = vpop.f32.mrf.mxu0  ;;  %3326 = vmatpush3.bf16.msra.mxu0 %v3729_v1 }
 0xabe   :  { %1174 = vadd.xlane.f32.xlu0 %v1173_v8 }
 0xabf   :  { %v3492_v13 = vpop.f32.mrf.mxu0 }
 0xb47   :  { %v1175_v17 = vpop.xlane.xlu0 %1174 }
 0xb48   :  { %v1176_v18 = vmul.f32 0.0078125, %v1175_v17 }
 0xb4a   :  { %v1177_v19 = vsub.f32 %v1173_v8, %v1176_v18 }
 0xb4c   :  { %v1178_v20 = vmul.f32 %v1177_v19, %v1177_v19 }
 0xb4e   :  { %1179 = vadd.xlane.f32.xlu1 %v1178_v20 }
 0xbd7   :  { %v1180_v37 = vpop.xlane.xlu1 %1179 }
 0xbd8   :  { %v1181_v38 = vmul.f32 0.0078125, %v1180_v37  ;;  %v3731_v37 = vld [vmem:[%s4969_s4 + $0xb0] sm:$0xff]  }
 0xbda   :  { %v1182_v39 = vadd.f32 1e-05, %v1181_v38 }
 0xbdc   :  { %3862 = vrsqrt.f32 %v1182_v39 }
 0xbe9   :  { %v3863_v41 = vpop.eup %3862 }
 0xbea   :  { %v1184_v42 = vmul.f32 %v3863_v41, %v1177_v19 }
 0xbec   :  { %v1189_v44 = vmul.f32 %v1188_v40, %v1184_v42  ;;  %v3732_v42 = vld [vmem:[%s4969_s4 + $0xa8] sm:$0xff]  }
 0xbee   :  { %v4711_v47 = vadd.f32 %v1193_v43, %v1189_v44  ;;  %v3733_v43 = vld [vmem:[%s4969_s4 + $0xa0] sm:$0xff]   ;;  %v3734_v44 = vld [vmem:[%s4969_s4 + $0x98] sm:$0xff]  }
 0xbf0   :  { %v1212_v48 = vpack.c.bf16 %v4711_v47, %v4711_v47 }
 0xbf2   :  { %1334 = vmatmul.mubr.bf16.vlgmr.msra.gmra.mxu1 %v1212_v48  ;;  %v3736_v48 = vld [vmem:[%s4969_s4 + $0x88] sm:$0xff]  }
 0xbf3   :  { %3509 = vmatprep.mubr.msk.bf16.mxu1 %vm4342_vm0, %v4341_v0  ;;  %3494 = vmatpush3.bf16.msra.mxu1 %v3730_v36  ;;  %v1677_v36 = vrot.slane %v4759_v62, %v4633_v45 }
 0xbf4   :  { %3495 = vmatprep.subr.bf16.mxu1 %v4341_v0 }
 0xbf7   :  { %3496 = vmatpush3.bf16.msra.mxu1 %v3731_v37 }
 0xbf8   :  { %3497 = vmatprep.subr.bf16.mxu1 %v4341_v0 }
 0xbfb   :  { %3498 = vmatpush3.bf16.msra.mxu1 %v3732_v42 }
 0xbfc   :  { %3499 = vmatprep.subr.bf16.mxu1 %v4341_v0 }
 0xbff   :  { %3500 = vmatpush3.bf16.msra.mxu1 %v3733_v43  ;;  %v3764_v43 = vld [vmem:[#allocation16 + $0x170] sm:$0xff]  }
 0xc00   :  { %3501 = vmatprep.subr.bf16.mxu1 %v4341_v0 }
 0xc03   :  { %3502 = vmatpush3.bf16.msra.mxu1 %v3734_v44  ;;  %v3765_v44 = vld [vmem:[#allocation16 + $0x130] sm:$0xff]  }
 0xc04   :  { %3503 = vmatprep.subr.bf16.mxu1 %v4341_v0 }
 0xcb2   :  { %v1335_v9 = vpop.f32.mrf.mxu1 }
 0xcb3   :  { %v1336_v7 = vadd.f32 %v1335_v9, %v1216_v4 }
 0xcb4   :  { %v1337_v8 = vpop.f32.mrf.mxu1 }
 0xcb5   :  { %v1344_v12 = vmul.f32 0.70710677, %v1336_v7  ;;  %v1338_v13 = vadd.f32 %v1337_v8, %v1220_v6  ;;  %v1342_v19 = vmul.f32 0.5, %v1336_v7  ;;  %v3738_v8 = vld [vmem:[#allocation14 + $0x170] ss:$8 sps:$4 sm:$0xff]  }
 0xcb6   :  { %v1339_v14 = vpop.f32.mrf.mxu1 }
 0xcb7   :  { %3864 = verf.f32 %v1344_v12  ;;  %v1345_v15 = vmul.f32 0.70710677, %v1338_v13  ;;  %v1343_v20 = vmul.f32 0.5, %v1338_v13  ;;  %v3740_v12 = vld [vmem:[#allocation14 + $0x174] ss:$8 sps:$4 sm:$0xff]  }
 0xcb8   :  { %v1340_v16 = vpop.f32.mrf.mxu1  ;;  %v3743_v13 = vld [vmem:[#allocation14 + $0x164] ss:$8 sps:$4 sm:$0xff]   ;;  %1790 = vmatprep.subr.bf16.mxu0 %v3740_v12 }
 0xcb9   :  { %3866 = verf.f32 %v1345_v15 }
 0xcc4   :  { %v3865_v11 = vpop.eup %3864 }
 0xcc5   :  { %v1348_v17 = vadd.f32 1.0, %v3865_v11 }
 0xcc6   :  { %v3867_v18 = vpop.eup %3866 }
 0xcc7   :  { %v1349_v21 = vadd.f32 1.0, %v3867_v18  ;;  %v1350_v22 = vmul.f32 %v1348_v17, %v1342_v19  ;;  %v3746_v17 = vld [vmem:[#allocation14 + $0x154] ss:$8 sps:$4 sm:$0xff]   ;;  %v3744_v18 = vld [vmem:[#allocation14 + $0x150] ss:$8 sps:$4 sm:$0xff]  }
 0xcc8   :  { %v3747_v19 = vld [vmem:[#allocation14 + $0x140] ss:$8 sps:$4 sm:$0xff]  }
 0xcc9   :  { %v1351_v23 = vmul.f32 %v1349_v21, %v1343_v20  ;;  %v1385_v25 = vpack.c.bf16 %v1350_v22, %v1350_v22  ;;  %v3749_v20 = vld [vmem:[#allocation14 + $0x144] ss:$8 sps:$4 sm:$0xff]   ;;  %v3752_v21 = vld [vmem:[#allocation14 + $0x134] ss:$8 sps:$4 sm:$0xff]   ;;  %v3750_v22 = vld [vmem:[#allocation14 + $0x130] ss:$8 sps:$4 sm:$0xff]  }
 0xccb   :  { %v1386_v24 = vpack.c.bf16 %v1351_v23, %v1351_v23  ;;  %v3755_v23 = vld [vmem:[#allocation14 + $0x124] ss:$8 sps:$4 sm:$0xff]  }
 0xccd   :  { %1519 = vmatprep.mubr.bf16.mxu0 %v1386_v24  ;;  %v3753_v24 = vld [vmem:[#allocation14 + $0x120] ss:$8 sps:$4 sm:$0xff]  }
 0xcce   :  { %1520 = vmatmul.mubr.bf16.vlgmr.msra.gmra.mxu0 %v1385_v25  ;;  %v3758_v25 = vld [vmem:[#allocation14 + $0x114] ss:$8 sps:$4 sm:$0xff]  }
 0xccf   :  { %1822 = vmatprep.mubr.bf16.mxu0 %v4343_v34  ;;  %1791 = vmatpush1.bf16.msra.mxu0 %v3738_v8 }
 0xcd0   :  { %1792 = vmatprep.subr.bf16.mxu0 %v3743_v13 }
 0xcd3   :  { %1793 = vmatpush1.bf16.msra.mxu0 %v3741_v3 }
 0xcd4   :  { %1794 = vmatprep.subr.bf16.mxu0 %v3746_v17 }
 0xcd7   :  { %1795 = vmatpush1.bf16.msra.mxu0 %v3744_v18 }
 0xcd8   :  { %1796 = vmatprep.subr.bf16.mxu0 %v3749_v20 }
 0xcdb   :  { %1797 = vmatpush1.bf16.msra.mxu0 %v3747_v19 }
 0xcdc   :  { %1798 = vmatprep.subr.bf16.mxu0 %v3752_v21 }
 0xcdf   :  { %1799 = vmatpush1.bf16.msra.mxu0 %v3750_v22 }
 0xce0   :  { %1800 = vmatprep.subr.bf16.mxu0 %v3755_v23  ;;  %v1879_v23 = vrot.slane %v4759_v62, %v4656_v30 }
 0xce3   :  { %1801 = vmatpush1.bf16.msra.mxu0 %v3753_v24 }
 0xce4   :  { %1802 = vmatprep.subr.bf16.mxu0 %v3758_v25 }
 0xd8e   :  { %v3327_v26 = vpop.f32.mrf.mxu0 }
 0xd90   :  { %v3328_v28 = vpop.f32.mrf.mxu0 }
 0xd91   :  { %v3329_v29 = vadd.f32 %v3328_v28, %v3327_v26  ;;  %v3756_v26 = vld [vmem:[#allocation14 + $0x110] ss:$8 sps:$4 sm:$0xff]   ;;  %v3759_v28 = vld [vmem:[#allocation14 + $0x100] ss:$8 sps:$4 sm:$0xff]  }
 0xd92   :  { %v3330_v31 = vpop.f32.mrf.mxu0  ;;  %1803 = vmatpush1.bf16.msra.mxu0 %v3756_v26 }
 0xd93   :  { %v1522_v32 = vadd.f32 %v3329_v29, %v1390_v27  ;;  %v3761_v27 = vld [vmem:[#allocation14 + $0x104] ss:$8 sps:$4 sm:$0xff]   ;;  %v3762_v29 = vld [vmem:[#allocation16 + $0x178] sm:$0xff]  }
 0xd94   :  { %v3331_v33 = vpop.f32.mrf.mxu0  ;;  %1804 = vmatprep.subr.bf16.mxu0 %v3761_v27  ;;  %v3763_v31 = vld [vmem:[#allocation16 + $0x138] sm:$0xff]  }
 0xd95   :  { %v1527_v35 = vadd.f32 %v1522_v32, %v4711_v47  ;;  %v3735_v47 = vld [vmem:[%s4969_s4 + $0x90] sm:$0xff]  }
 0xd96   :  { %3504 = vmatpush3.bf16.msra.mxu1 %v3735_v47  ;;  %1805 = vmatpush1.bf16.msra.mxu0 %v3759_v28  ;;  %v3766_v47 = vld [vmem:[#allocation16 + $0x168] sm:$0xff]  }
 0xd97   :  { %1528 = vadd.xlane.f32.xlu0 %v1527_v35  ;;  %3505 = vmatprep.subr.bf16.mxu1 %v4341_v0 }
 0xd98   :  { %3513 = vmatprep.subr.bf16.mxu0 %v4341_v0 }
 0xd9a   :  { %3506 = vmatpush3.bf16.msra.mxu1 %v3736_v48  ;;  %v3767_v48 = vld [vmem:[#allocation16 + $0x128] sm:$0xff]  }
 0xd9b   :  { %3507 = vmatprep.subr.bf16.mxu1 %v4341_v0 }
 0xd9e   :  { %3508 = vmatpush3.bf16.msra.mxu1 %v3737_v49  ;;  %v3768_v49 = vld [vmem:[#allocation16 + $0x160] sm:$0xff]  }
 0xd9f   :  { %3342 = vmatprep.subr.bf16.mxu1 %v3762_v29 }
 0xe20   :  { %v1529_v38 = vpop.xlane.xlu0 %1528 }
 0xe21   :  { %v1530_v39 = vmul.f32 0.0078125, %v1529_v38 }
 0xe23   :  { %v1531_v40 = vsub.f32 %v1527_v35, %v1530_v39  ;;  %v1682_v39 = vrot.slane %v4759_v62, %v4636_v46 }
 0xe25   :  { %v1532_v41 = vmul.f32 %v1531_v40, %v1531_v40 }
 0xe27   :  { %1533 = vadd.xlane.f32.xlu1 %v1532_v41 }
 0xeb0   :  { %v1534_v50 = vpop.xlane.xlu1 %1533 }
 0xeb1   :  { %v1535_v51 = vmul.f32 0.0078125, %v1534_v50  ;;  %v3769_v50 = vld [vmem:[#allocation16 + $0x120] sm:$0xff]  }
 0xeb3   :  { %v1536_v52 = vadd.f32 1e-05, %v1535_v51  ;;  %v3770_v51 = vld [vmem:[#allocation16 + $0x158] sm:$0xff]  }
 0xeb5   :  { %3868 = vrsqrt.f32 %v1536_v52  ;;  %v3771_v52 = vld [vmem:[#allocation16 + $0x118] sm:$0xff]  }
 0xec2   :  { %v3869_v54 = vpop.eup %3868 }
 0xec3   :  { %v1538_v55 = vmul.f32 %v3869_v54, %v1531_v40  ;;  %v3773_v54 = vld [vmem:[#allocation16 + $0x110] sm:$0xff]  }
 0xec5   :  { %v1543_v59 = vmul.f32 %v1542_v53, %v1538_v55  ;;  %v3772_v53 = vld [vmem:[#allocation16 + $0x150] sm:$0xff]   ;;  %v3774_v55 = vld [vmem:[#allocation16 + $0x148] sm:$0xff]  }
 0xec7   :  { %v1548_v60 = vadd.f32 %v1547_v56, %v1543_v59  ;;  %v3775_v56 = vld [vmem:[#allocation16 + $0x108] sm:$0xff]   ;;  %v3776_v59 = vld [vmem:[#allocation16 + $0x140] sm:$0xff]  }
 0xec9   :  { %v1569_v61 = vpack.c.bf16 %v1548_v60, %v1548_v60 }
 0xecb   :  { %3510 = vmatmul.mubr.bf16.vlgmr.msra.gmra.mxu1 %v1569_v61  ;;  %v1551_v61 = vld [vmem:[#allocation17 + $0x28] sm:$0xff] }
 0xecc   :  { %3343 = vmatpush3.bf16.msra.mxu1 %v3763_v31  ;;  %v3778_v31 = vld [vmem:[%s4969_s4 + $0xf8] sm:$0xff]  }
 0xecd   :  { %3344 = vmatprep.subr.bf16.mxu1 %v3764_v43 }
 0xed0   :  { %3345 = vmatpush3.bf16.msra.mxu1 %v3765_v44 }
 0xed1   :  { %3346 = vmatprep.subr.bf16.mxu1 %v3766_v47 }
 0xed4   :  { %3347 = vmatpush3.bf16.msra.mxu1 %v3767_v48  ;;  %v2031_v48 = vrot.slane %v4759_v62, %v4693_v57 }
 0xed5   :  { %3348 = vmatprep.subr.bf16.mxu1 %v3768_v49 }
 0xed8   :  { %3349 = vmatpush3.bf16.msra.mxu1 %v3769_v50 }
 0xed9   :  { %3350 = vmatprep.subr.bf16.mxu1 %v3770_v51  ;;  %v2036_v51 = vrot.slane %v4759_v62, %v4696_v58 }
 0xedc   :  { %3351 = vmatpush3.bf16.msra.mxu1 %v3771_v52 }
 0xedd   :  { %3352 = vmatprep.subr.bf16.mxu1 %v3772_v53 }
 0xee0   :  { %3353 = vmatpush3.bf16.msra.mxu1 %v3773_v54 }
 0xee1   :  { %3354 = vmatprep.subr.bf16.mxu1 %v3774_v55  ;;  %v4816_v55 = vld [vmem:[#allocation17 + $0x30] sm:$0xff] }
 0xee4   :  { %3355 = vmatpush3.bf16.msra.mxu1 %v3775_v56  ;;  %v2062_v56 = vrot.slane %v4816_v55, %v4624_v10  ;;  %v3794_v10 = vld [vmem:[#allocation14 + $0x1d4] ss:$8 sps:$4 sm:$0xff]  }
 0xee5   :  { %3356 = vmatprep.subr.bf16.mxu1 %v3776_v59 }
 0xf8b   :  { %v1656_v1 = vpop.f32.mrf.mxu1 }
 0xf8c   :  { %v1657_v2 = vadd.f32 %v1656_v1, %v1573_v63  ;;  %v1705_v63 = vrot.slane %v4759_v62, %v4649_v5  ;;  %v1709_v1 = vrot.slane %v1551_v61, %v4649_v5  ;;  %v3789_v62 = vld [vmem:[#allocation14 + $0x1e0] ss:$8 sps:$4 sm:$0xff]  }
 0xf8d   :  { %v3511_v4 = vpop.f32.mrf.mxu1 }
 0xf8e   :  { %v1662_v6 = vadd.f32 %v1657_v2, %v1548_v60  ;;  %v3777_v60 = vld [vmem:[#allocation16 + $0x100] sm:$0xff]  }
 0xf8f   :  { %v1659_v9 = vpop.f32.mrf.mxu1  ;;  %3357 = vmatpush3.bf16.msra.mxu1 %v3777_v60 }
 0xf90   :  { %1663 = vadd.xlane.f32.xlu0 %v1662_v6 }
 0xf91   :  { %v3512_v7 = vpop.f32.mrf.mxu1 }
0x1019   :  { %v1664_v14 = vpop.xlane.xlu0 %1663 }
0x101a   :  { %v1665_v15 = vmul.f32 0.0078125, %v1664_v14 }
0x101c   :  { %v1666_v16 = vsub.f32 %v1662_v6, %v1665_v15 }
0x101e   :  { %v1667_v11 = vmul.f32 %v1666_v16, %v1666_v16 }
0x1020   :  { %1668 = vadd.xlane.f32.xlu1 %v1667_v11 }
0x10a9   :  { %v1669_v32 = vpop.xlane.xlu1 %1668 }
0x10aa   :  { %v1670_v33 = vmul.f32 0.0078125, %v1669_v32 }
0x10ac   :  { %v1671_v35 = vadd.f32 1e-05, %v1670_v33 }
0x10ae   :  { %3870 = vrsqrt.f32 %v1671_v35 }
0x10bb   :  { %v3871_v37 = vpop.eup %3870 }
0x10bc   :  { %v1673_v38 = vmul.f32 %v3871_v37, %v1666_v16  ;;  %v3780_v37 = vld [vmem:[%s4969_s4 + $0xe8] sm:$0xff]  }
0x10be   :  { %v1678_v40 = vmul.f32 %v1677_v36, %v1673_v38  ;;  %v3781_v38 = vld [vmem:[%s4969_s4 + $0xe0] sm:$0xff]  }
0x10c0   :  { %v4768_v41 = vadd.f32 %v1682_v39, %v1678_v40  ;;  %v3782_v39 = vld [vmem:[%s4969_s4 + $0xd8] sm:$0xff]   ;;  %v3783_v40 = vld [vmem:[%s4969_s4 + $0xd0] sm:$0xff]  }
0x10c2   :  { %v1701_v42 = vpack.c.bf16 %v4768_v41, %v4768_v41 }
0x10c4   :  { %1823 = vmatmul.mubr.bf16.vlgmr.msra.gmra.mxu0 %v1701_v42  ;;  %v3785_v42 = vld [vmem:[%s4969_s4 + $0xc0] sm:$0xff]  }
0x10c5   :  { %3529 = vmatprep.mubr.msk.bf16.mxu0 %vm4342_vm0, %v4341_v0  ;;  %3514 = vmatpush3.bf16.msra.mxu0 %v3778_v31 }
0x10c6   :  { %3515 = vmatprep.subr.bf16.mxu0 %v4341_v0 }
0x1184   :  { %v1824_v2 = vpop.f32.mrf.mxu0 }
0x1185   :  { %v1825_v4 = vadd.f32 %v1824_v2, %v1705_v63 }
0x1186   :  { %v1826_v6 = vpop.f32.mrf.mxu0 }
0x1187   :  { %v1833_v9 = vmul.f32 0.70710677, %v1825_v4  ;;  %v1827_v7 = vadd.f32 %v1826_v6, %v1709_v1  ;;  %v1831_v16 = vmul.f32 0.5, %v1825_v4  ;;  %v3786_v4 = vld [vmem:[#allocation14 + $0x1f0] ss:$8 sps:$4 sm:$0xff]  }
0x1188   :  { %v1828_v8 = vpop.f32.mrf.mxu0  ;;  %v3788_v6 = vld [vmem:[#allocation14 + $0x1f4] ss:$8 sps:$4 sm:$0xff]  }
0x1189   :  { %3872 = verf.f32 %v1833_v9  ;;  %v1834_v12 = vmul.f32 0.70710677, %v1827_v7  ;;  %v1832_v11 = vmul.f32 0.5, %v1827_v7  ;;  %v3791_v9 = vld [vmem:[#allocation14 + $0x1e4] ss:$8 sps:$4 sm:$0xff]   ;;  %2279 = vmatprep.subr.bf16.mxu1 %v3788_v6 }
0x118a   :  { %v1829_v13 = vpop.f32.mrf.mxu0 }
0x118b   :  { %3874 = verf.f32 %v1834_v12 }
0x1196   :  { %v3873_v3 = vpop.eup %3872 }
0x1197   :  { %v1837_v14 = vadd.f32 1.0, %v3873_v3  ;;  %v3792_v3 = vld [vmem:[#allocation14 + $0x1d0] ss:$8 sps:$4 sm:$0xff]  }
0x1198   :  { %v3875_v15 = vpop.eup %3874 }
0x1199   :  { %v1838_v17 = vadd.f32 1.0, %v3875_v15  ;;  %v1839_v18 = vmul.f32 %v1837_v14, %v1831_v16  ;;  %v3795_v14 = vld [vmem:[#allocation14 + $0x1c0] ss:$8 sps:$4 sm:$0xff]   ;;  %v3797_v15 = vld [vmem:[#allocation14 + $0x1c4] ss:$8 sps:$4 sm:$0xff]  }
0x119a   :  { %v3800_v16 = vld [vmem:[#allocation14 + $0x1b4] ss:$8 sps:$4 sm:$0xff]  }
0x119b   :  { %v1840_v19 = vmul.f32 %v1838_v17, %v1832_v11  ;;  %v1874_v21 = vpack.c.bf16 %v1839_v18, %v1839_v18  ;;  %v3798_v11 = vld [vmem:[#allocation14 + $0x1b0] ss:$8 sps:$4 sm:$0xff]   ;;  %v3803_v17 = vld [vmem:[#allocation14 + $0x1a4] ss:$8 sps:$4 sm:$0xff]   ;;  %v3801_v18 = vld [vmem:[#allocation14 + $0x1a0] ss:$8 sps:$4 sm:$0xff]  }
0x119d   :  { %v1875_v20 = vpack.c.bf16 %v1840_v19, %v1840_v19  ;;  %v3806_v19 = vld [vmem:[#allocation14 + $0x194] ss:$8 sps:$4 sm:$0xff]  }
0x119f   :  { %2008 = vmatprep.mubr.bf16.mxu1 %v1875_v20  ;;  %v3804_v20 = vld [vmem:[#allocation14 + $0x190] ss:$8 sps:$4 sm:$0xff]  }
0x11a0   :  { %2009 = vmatmul.mubr.bf16.vlgmr.msra.gmra.mxu1 %v1874_v21  ;;  %v3809_v21 = vld [vmem:[#allocation14 + $0x184] ss:$8 sps:$4 sm:$0xff]  }
0x11a1   :  { %2311 = vmatprep.mubr.bf16.mxu1 %v4343_v34  ;;  %v3779_v34 = vld [vmem:[%s4969_s4 + $0xf0] sm:$0xff]   ;;  %2280 = vmatpush1.bf16.msra.mxu1 %v3786_v4 }
0x11a2   :  { %3516 = vmatpush3.bf16.msra.mxu0 %v3779_v34  ;;  %2281 = vmatprep.subr.bf16.mxu1 %v3791_v9  ;;  %v2171_v34 = vrot.slane %v4816_v55, %v4636_v46  ;;  %v3817_v46 = vld [vmem:[#allocation16 + $0x1a0] sm:$0xff]  }
0x11a3   :  { %3517 = vmatprep.subr.bf16.mxu0 %v4341_v0 }
0x11a5   :  { %2282 = vmatpush1.bf16.msra.mxu1 %v3789_v62 }
0x11a6   :  { %3518 = vmatpush3.bf16.msra.mxu0 %v3780_v37  ;;  %2283 = vmatprep.subr.bf16.mxu1 %v3794_v10  ;;  %v3813_v37 = vld [vmem:[#allocation16 + $0x1b0] sm:$0xff]  }
0x11a7   :  { %3519 = vmatprep.subr.bf16.mxu0 %v4341_v0 }
0x11a9   :  { %2284 = vmatpush1.bf16.msra.mxu1 %v3792_v3  ;;  %v2368_v3 = vrot.slane %v4816_v55, %v4656_v30 }
0x11aa   :  { %3520 = vmatpush3.bf16.msra.mxu0 %v3781_v38  ;;  %2285 = vmatprep.subr.bf16.mxu1 %v3797_v15  ;;  %v3815_v38 = vld [vmem:[#allocation16 + $0x1a8] sm:$0xff]  }
0x11ab   :  { %3521 = vmatprep.subr.bf16.mxu0 %v4341_v0 }
0x11ad   :  { %2286 = vmatpush1.bf16.msra.mxu1 %v3795_v14 }
0x11ae   :  { %3522 = vmatpush3.bf16.msra.mxu0 %v3782_v39  ;;  %2287 = vmatprep.subr.bf16.mxu1 %v3800_v16  ;;  %v3816_v39 = vld [vmem:[#allocation16 + $0x1e0] sm:$0xff]  }
0x11af   :  { %3523 = vmatprep.subr.bf16.mxu0 %v4341_v0 }
0x11b1   :  { %2288 = vmatpush1.bf16.msra.mxu1 %v3798_v11 }
0x11b2   :  { %3524 = vmatpush3.bf16.msra.mxu0 %v3783_v40  ;;  %2289 = vmatprep.subr.bf16.mxu1 %v3803_v17  ;;  %v3818_v40 = vld [vmem:[#allocation16 + $0x1d8] sm:$0xff]  }
0x11b3   :  { %3525 = vmatprep.subr.bf16.mxu0 %v4341_v0 }
0x11b5   :  { %2290 = vmatpush1.bf16.msra.mxu1 %v3801_v18 }
0x11b6   :  { %2291 = vmatprep.subr.bf16.mxu1 %v3806_v19  ;;  %v3826_v19 = vld [vmem:[#allocation19 + $0x38] sm:$0xff]  }
0x11b9   :  { %2292 = vmatpush1.bf16.msra.mxu1 %v3804_v20  ;;  %v3827_v20 = vld [vmem:[#allocation19 + $0x30] sm:$0xff]  }
0x11ba   :  { %2293 = vmatprep.subr.bf16.mxu1 %v3809_v21 }
0x1260   :  { %v3358_v22 = vpop.f32.mrf.mxu1 }
0x1262   :  { %v3359_v24 = vpop.f32.mrf.mxu1 }
0x1263   :  { %v3360_v25 = vadd.f32 %v3359_v24, %v3358_v22  ;;  %v3807_v22 = vld [vmem:[#allocation14 + $0x180] ss:$8 sps:$4 sm:$0xff]   ;;  %v3811_v24 = vld [vmem:[#allocation16 + $0x1b8] sm:$0xff]  }
0x1264   :  { %v3361_v26 = vpop.f32.mrf.mxu1  ;;  %2294 = vmatpush1.bf16.msra.mxu1 %v3807_v22 }
0x1265   :  { %v2011_v27 = vadd.f32 %v3360_v25, %v1879_v23  ;;  %3533 = vmatprep.subr.bf16.mxu1 %v4341_v0  ;;  %v3810_v23 = vld [vmem:[#allocation16 + $0x1f8] sm:$0xff]  }
0x1266   :  { %v3362_v28 = vpop.f32.mrf.mxu1 }
0x1267   :  { %v2016_v29 = vadd.f32 %v2011_v27, %v4768_v41  ;;  %v3784_v41 = vld [vmem:[%s4969_s4 + $0xc8] sm:$0xff]   ;;  %v2166_v28 = vrot.slane %v4816_v55, %v4633_v45  ;;  %v3814_v45 = vld [vmem:[#allocation16 + $0x1e8] sm:$0xff]  }
0x1268   :  { %3526 = vmatpush3.bf16.msra.mxu0 %v3784_v41  ;;  %v3819_v41 = vld [vmem:[#allocation16 + $0x198] sm:$0xff]  }
0x1269   :  { %2017 = vadd.xlane.f32.xlu0 %v2016_v29  ;;  %3527 = vmatprep.subr.bf16.mxu0 %v4341_v0 }
0x126c   :  { %3528 = vmatpush3.bf16.msra.mxu0 %v3785_v42  ;;  %v3820_v42 = vld [vmem:[#allocation16 + $0x1d0] sm:$0xff]  }
0x126d   :  { %3373 = vmatprep.subr.bf16.mxu0 %v3810_v23 }
0x12f2   :  { %v2018_v32 = vpop.xlane.xlu0 %2017 }
0x12f3   :  { %v2019_v33 = vmul.f32 0.0078125, %v2018_v32 }
0x12f5   :  { %v2020_v35 = vsub.f32 %v2016_v29, %v2019_v33 }
0x12f7   :  { %v2021_v36 = vmul.f32 %v2020_v35, %v2020_v35 }
0x12f9   :  { %2022 = vadd.xlane.f32.xlu1 %v2021_v36  ;;  %v3812_v36 = vld [vmem:[#allocation16 + $0x1f0] sm:$0xff]  }
0x1382   :  { %v2023_v43 = vpop.xlane.xlu1 %2022 }
0x1383   :  { %v2024_v44 = vmul.f32 0.0078125, %v2023_v43  ;;  %v3821_v43 = vld [vmem:[#allocation16 + $0x190] sm:$0xff]  }
0x1385   :  { %v2025_v47 = vadd.f32 1e-05, %v2024_v44  ;;  %v3822_v44 = vld [vmem:[#allocation16 + $0x1c8] sm:$0xff]  }
0x1387   :  { %3876 = vrsqrt.f32 %v2025_v47  ;;  %v3823_v47 = vld [vmem:[#allocation16 + $0x188] sm:$0xff]  }
0x1394   :  { %v3877_v49 = vpop.eup %3876 }
0x1395   :  { %v2027_v50 = vmul.f32 %v3877_v49, %v2020_v35  ;;  %v3825_v49 = vld [vmem:[#allocation16 + $0x180] sm:$0xff]  }
0x1397   :  { %v2032_v52 = vmul.f32 %v2031_v48, %v2027_v50  ;;  %v3824_v48 = vld [vmem:[#allocation16 + $0x1c0] sm:$0xff]   ;;  %v2040_v50 = vld [vmem:[#allocation17 + $0x38] sm:$0xff] }
0x1399   :  { %v2037_v53 = vadd.f32 %v2036_v51, %v2032_v52  ;;  %v2194_v51 = vrot.slane %v4816_v55, %v4649_v5  ;;  %v2198_v52 = vrot.slane %v2040_v50, %v4649_v5 }
0x139b   :  { %v2058_v54 = vpack.c.bf16 %v2037_v53, %v2037_v53 }
0x139d   :  { %3530 = vmatmul.mubr.bf16.vlgmr.msra.gmra.mxu0 %v2058_v54 }
0x139e   :  { %3374 = vmatpush3.bf16.msra.mxu0 %v3811_v24  ;;  %v3828_v24 = vld [vmem:[#allocation19 + $0x28] sm:$0xff]  }
0x139f   :  { %3375 = vmatprep.subr.bf16.mxu0 %v3812_v36  ;;  %v3839_v36 = vld [vmem:[%s4934_s15 + $0x10] sm:$0xff]  }
0x13a2   :  { %3376 = vmatpush3.bf16.msra.mxu0 %v3813_v37  ;;  %v3840_v37 = vld [vmem:[%s4934_s15 + $0x8] sm:$0xff]  }
0x13a3   :  { %3377 = vmatprep.subr.bf16.mxu0 %v3814_v45 }
0x13a6   :  { %3378 = vmatpush3.bf16.msra.mxu0 %v3815_v38 }
0x13a7   :  { %3379 = vmatprep.subr.bf16.mxu0 %v3816_v39 }
0x13aa   :  { %3380 = vmatpush3.bf16.msra.mxu0 %v3817_v46  ;;  %v2520_v46 = vrot.slane %v4816_v55, %v4693_v57  ;;  %v3225_v57 = vld [vmem:[#allocation20] ss:$0 sm:$0xff] }
0x13ab   :  { %3381 = vmatprep.subr.bf16.mxu0 %v3818_v40 }
0x13ae   :  { %3382 = vmatpush3.bf16.msra.mxu0 %v3819_v41 }
0x13af   :  { %3383 = vmatprep.subr.bf16.mxu0 %v3820_v42  ;;  %v2525_v42 = vrot.slane %v4816_v55, %v4696_v58 }
0x13b2   :  { %3384 = vmatpush3.bf16.msra.mxu0 %v3821_v43 }
0x13b3   :  { %3385 = vmatprep.subr.bf16.mxu0 %v3822_v44 }
0x13b6   :  { %3386 = vmatpush3.bf16.msra.mxu0 %v3823_v47 }
0x13b7   :  { %3387 = vmatprep.subr.bf16.mxu0 %v3824_v48  ;;  %v3841_v48 = vld [vmem:[%s4934_s15] sm:$0xff]  }
0x13ba   :  { %3388 = vmatpush3.bf16.msra.mxu0 %v3825_v49 }
0x13bb   :  { %3553 = vmatprep.subr.bf16.mxu0 %v4341_v0 }
0x145d   :  { %v2145_v59 = vpop.f32.mrf.mxu0 }
0x145e   :  { %v2146_v60 = vadd.f32 %v2145_v59, %v2062_v56 }
0x145f   :  { %v3531_v61 = vpop.f32.mrf.mxu0 }
0x1460   :  { %v2151_v63 = vadd.f32 %v2146_v60, %v2037_v53 }
0x1461   :  { %v2148_v1 = vpop.f32.mrf.mxu0 }
0x1462   :  { %2152 = vadd.xlane.f32.xlu0 %v2151_v63 }
0x1463   :  { %v3532_v2 = vpop.f32.mrf.mxu0 }
0x14eb   :  { %v2153_v7 = vpop.xlane.xlu0 %2152 }
0x14ec   :  { %v2154_v8 = vmul.f32 0.0078125, %v2153_v7 }
0x14ee   :  { %v2155_v12 = vsub.f32 %v2151_v63, %v2154_v8 }
0x14f0   :  { %v2156_v13 = vmul.f32 %v2155_v12, %v2155_v12 }
0x14f2   :  { %2157 = vadd.xlane.f32.xlu1 %v2156_v13 }
0x157b   :  { %v2158_v25 = vpop.xlane.xlu1 %2157 }
0x157c   :  { %v2159_v26 = vmul.f32 0.0078125, %v2158_v25  ;;  %v3829_v25 = vld [vmem:[#allocation19 + $0x20] sm:$0xff]  }
0x157e   :  { %v2160_v27 = vadd.f32 1e-05, %v2159_v26  ;;  %v3830_v26 = vld [vmem:[#allocation19 + $0x18] sm:$0xff]  }
0x1580   :  { %3878 = vrsqrt.f32 %v2160_v27  ;;  %v3831_v27 = vld [vmem:[#allocation19 + $0x10] sm:$0xff]  }
0x158d   :  { %v3879_v29 = vpop.eup %3878 }
0x158e   :  { %v2162_v31 = vmul.f32 %v3879_v29, %v2155_v12  ;;  %v3833_v29 = vld [vmem:[#allocation19] sm:$0xff]  }
0x1590   :  { %v2167_v32 = vmul.f32 %v2166_v28, %v2162_v31  ;;  %v3832_v28 = vld [vmem:[#allocation19 + $0x8] sm:$0xff]  }
0x1591   :  { %v3834_v31 = vld [vmem:[%s4934_s15 + $0x38] sm:$0xff]  }
0x1592   :  { %v4825_v33 = vadd.f32 %v2171_v34, %v2167_v32  ;;  %v3835_v34 = vld [vmem:[%s4934_s15 + $0x30] sm:$0xff]   ;;  %v3836_v32 = vld [vmem:[%s4934_s15 + $0x28] sm:$0xff]  }
0x1594   :  { %v2190_v35 = vpack.c.bf16 %v4825_v33, %v4825_v33 }
0x1596   :  { %2312 = vmatmul.mubr.bf16.vlgmr.msra.gmra.mxu1 %v2190_v35  ;;  %v3838_v35 = vld [vmem:[%s4934_s15 + $0x18] sm:$0xff]  }
0x1597   :  { %3549 = vmatprep.mubr.msk.bf16.mxu1 %vm4342_vm0, %v4341_v0  ;;  %3534 = vmatpush3.bf16.msra.mxu1 %v3826_v19 }
0x1598   :  { %3535 = vmatprep.subr.bf16.mxu1 %v4341_v0 }
0x159b   :  { %3536 = vmatpush3.bf16.msra.mxu1 %v3827_v20 }
0x159c   :  { %3537 = vmatprep.subr.bf16.mxu1 %v4341_v0 }
0x159f   :  { %3538 = vmatpush3.bf16.msra.mxu1 %v3828_v24 }
0x15a0   :  { %3539 = vmatprep.subr.bf16.mxu1 %v4341_v0 }
0x15a3   :  { %3540 = vmatpush3.bf16.msra.mxu1 %v3829_v25 }
0x15a4   :  { %3541 = vmatprep.subr.bf16.mxu1 %v4341_v0 }
0x15a7   :  { %3542 = vmatpush3.bf16.msra.mxu1 %v3830_v26 }
0x15a8   :  { %3543 = vmatprep.subr.bf16.mxu1 %v4341_v0 }
0x15ab   :  { %3544 = vmatpush3.bf16.msra.mxu1 %v3831_v27 }
0x15ac   :  { %3545 = vmatprep.subr.bf16.mxu1 %v4341_v0 }
0x15af   :  { %3546 = vmatpush3.bf16.msra.mxu1 %v3832_v28 }
0x15b0   :  { %3547 = vmatprep.subr.bf16.mxu1 %v4341_v0 }
0x15b3   :  { %3548 = vmatpush3.bf16.msra.mxu1 %v3833_v29 }
0x15b4   :  { %3573 = vmatprep.subr.bf16.mxu1 %v4341_v0 }
0x1656   :  { %v2313_v53 = vpop.f32.mrf.mxu1 }
0x1657   :  { %v2314_v54 = vadd.f32 %v2313_v53, %v2194_v51  ;;  %v3234_v53 = vld [vmem:[#allocation22] ss:$0 sm:$0xff] }
0x1658   :  { %v2315_v56 = vpop.f32.mrf.mxu1 }
0x1659   :  { %v2322_v59 = vmul.f32 0.70710677, %v2314_v54  ;;  %v2316_v60 = vadd.f32 %v2315_v56, %v2198_v52  ;;  %v2320_v9 = vmul.f32 0.5, %v2314_v54 }
0x165a   :  { %v2317_v61 = vpop.f32.mrf.mxu1 }
0x165b   :  { %3880 = verf.f32 %v2322_v59  ;;  %v2323_v63 = vmul.f32 0.70710677, %v2316_v60  ;;  %v2321_v62 = vmul.f32 0.5, %v2316_v60 }
0x165c   :  { %v2318_v1 = vpop.f32.mrf.mxu1 }
0x165d   :  { %3882 = verf.f32 %v2323_v63 }
0x1668   :  { %v3881_v2 = vpop.eup %3880 }
0x1669   :  { %v2326_v4 = vadd.f32 1.0, %v3881_v2 }
0x166a   :  { %v3883_v6 = vpop.eup %3882 }
0x166b   :  { %v2327_v7 = vadd.f32 1.0, %v3883_v6  ;;  %v2328_v8 = vmul.f32 %v2326_v4, %v2320_v9 }
0x166d   :  { %v2329_v12 = vmul.f32 %v2327_v7, %v2321_v62  ;;  %v2363_v5 = vpack.c.bf16 %v2328_v8, %v2328_v8  ;;  %v3842_v62 = vld [vmem:[%s4938_s19 + $0x18] sm:$0xff]   ;;  %v3843_v7 = vld [vmem:[%s4938_s19 + $0x10] sm:$0xff]   ;;  %v3844_v8 = vld [vmem:[%s4938_s19 + $0x8] sm:$0xff]  }
0x166f   :  { %v2364_v13 = vpack.c.bf16 %v2329_v12, %v2329_v12  ;;  %v3845_v12 = vld [vmem:[%s4938_s19] sm:$0xff]  }
0x1671   :  { %2497 = vmatprep.mubr.bf16.mxu0 %v2364_v13 }
0x1672   :  { %2498 = vmatmul.mubr.bf16.vlgmr.msra.gmra.mxu0 %v2363_v5 }
0x1673   :  { %3569 = vmatprep.mubr.msk.bf16.mxu0 %vm4342_vm0, %v4341_v0  ;;  %3554 = vmatpush3.bf16.msra.mxu0 %v3834_v31 }
0x1674   :  { %3555 = vmatprep.subr.bf16.mxu0 %v4341_v0 }
0x1677   :  { %3556 = vmatpush3.bf16.msra.mxu0 %v3835_v34 }
0x1678   :  { %3557 = vmatprep.subr.bf16.mxu0 %v4341_v0 }
0x167b   :  { %3558 = vmatpush3.bf16.msra.mxu0 %v3836_v32 }
0x167c   :  { %3559 = vmatprep.subr.bf16.mxu0 %v4341_v0 }
0x1732   :  { %v3389_v10 = vpop.f32.mrf.mxu0 }
0x1734   :  { %v3390_v14 = vpop.f32.mrf.mxu0 }
0x1735   :  { %v3391_v15 = vadd.f32 %v3390_v14, %v3389_v10  ;;  %v3243_v14 = vld [vmem:[#allocation23] ss:$0 sm:$0xff] }
0x1736   :  { %v3392_v16 = vpop.f32.mrf.mxu0 }
0x1737   :  { %v2500_v11 = vadd.f32 %v3391_v15, %v2368_v3  ;;  %v3244_v16 = vld [vmem:[#allocation25] ss:$0 sm:$0xff] }
0x1738   :  { %v3393_v17 = vpop.f32.mrf.mxu0 }
0x1739   :  { %v2505_v18 = vadd.f32 %v2500_v11, %v4825_v33  ;;  %v3837_v33 = vld [vmem:[%s4934_s15 + $0x20] sm:$0xff]  }
0x173a   :  { %3560 = vmatpush3.bf16.msra.mxu0 %v3837_v33 }
0x173b   :  { %2506 = vadd.xlane.f32.xlu0 %v2505_v18  ;;  %3561 = vmatprep.subr.bf16.mxu0 %v4341_v0 }
0x173e   :  { %3562 = vmatpush3.bf16.msra.mxu0 %v3838_v35 }
0x173f   :  { %3563 = vmatprep.subr.bf16.mxu0 %v4341_v0 }
0x1742   :  { %3564 = vmatpush3.bf16.msra.mxu0 %v3839_v36  ;;  %v3846_v36 = vld [vmem:[%s4942_s23 + $0x8] sm:$0xff]  }
0x1743   :  { %3565 = vmatprep.subr.bf16.mxu0 %v4341_v0 }
0x1746   :  { %3566 = vmatpush3.bf16.msra.mxu0 %v3840_v37  ;;  %v3847_v37 = vld [vmem:[%s4942_s23] sm:$0xff]   ;;  %s4344_s23 = smov [#allocation32]  }
0x1747   :  { %3567 = vmatprep.subr.bf16.mxu0 %v4341_v0  ;;  %s2979_s29 = sshll.u32 %s4344_s23, 4  ;;  %s2980_s29 = int_to_ptr.vmem [resolvable:$true] %s2979_s29 }
0x1748   :  { %s4274_s4 = scalar_lea.vmem %s2980_s29, 128  ;;  %p4279_p12 = scmp.lt.s32.totalorder %s2980_s29, %s2980_s29 }
0x1749   :  { %p4275_p11 = scmp.ne.s32.totalorder %s2980_s29, %s4274_s4  ;;  %p4280_p13 = scmp.lt.s32.totalorder %s4274_s4, %s4274_s4 }
0x174a   :  { %3568 = vmatpush3.bf16.msra.mxu0 %v3841_v48 }
0x174b   :  { %3585 = vmatprep.subr.bf16.mxu0 %v4341_v0  ;;  %p4281_p0 = por %p4280_p13, %p4279_p12 }
0x174d   :  { %p4282_p1 = pnand %p4281_p0, %p4275_p11 }
0x17c4   :  { %v2507_v21 = vpop.xlane.xlu0 %2506 }
0x17c5   :  { %v2508_v22 = vmul.f32 0.0078125, %v2507_v21 }
0x17c7   :  { %v2509_v23 = vsub.f32 %v2505_v18, %v2508_v22 }
0x17c9   :  { %v2510_v30 = vmul.f32 %v2509_v23, %v2509_v23 }
0x17cb   :  { %2511 = vadd.xlane.f32.xlu1 %v2510_v30  ;;  %v3245_v30 = vld [vmem:[#allocation26] ss:$0 sm:$0xff] }
0x1854   :  { %v2512_v45 = vpop.xlane.xlu1 %2511 }
0x1855   :  { %v2513_v38 = vmul.f32 0.0078125, %v2512_v45 }
0x1857   :  { %v2514_v39 = vadd.f32 1e-05, %v2513_v38 }
0x1859   :  { %3884 = vrsqrt.f32 %v2514_v39 }
0x1866   :  { %v3885_v40 = vpop.eup %3884 }
0x1867   :  { %v2516_v41 = vmul.f32 %v3885_v40, %v2509_v23  ;;  %v3251_v40 = vld [vmem:[#allocation28] ss:$0 sm:$0xff] }
0x1869   :  { %v2521_v43 = vmul.f32 %v2520_v46, %v2516_v41 }
0x186b   :  { %v2526_v44 = vadd.f32 %v2525_v42, %v2521_v43  ;;  %v3252_v42 = vld [vmem:[#allocation29] ss:$0 sm:$0xff] }
0x186d   :  { %v2543_v47 = vpack.c.bf16 %v2526_v44, %v2526_v44 }
0x186f   :  { %3550 = vmatmul.mubr.bf16.vlgmr.msra.gmra.mxu1 %v2543_v47 }
0x1870   :  { %3581 = vmatprep.mubr.msk.bf16.mxu1 %vm4342_vm0, %v4341_v0  ;;  %3574 = vmatpush3.bf16.msra.mxu1 %v3842_v62 }
0x1871   :  { %3575 = vmatprep.subr.bf16.mxu1 %v4341_v0 }
0x1874   :  { %3576 = vmatpush3.bf16.msra.mxu1 %v3843_v7 }
0x1875   :  { %3577 = vmatprep.subr.bf16.mxu1 %v4341_v0 }
0x1878   :  { %3578 = vmatpush3.bf16.msra.mxu1 %v3844_v8 }
0x1879   :  { %3579 = vmatprep.subr.bf16.mxu1 %v4341_v0 }
0x187c   :  { %3580 = vmatpush3.bf16.msra.mxu1 %v3845_v12 }
0x192f   :  { %v2633_v49 = vpop.f32.mrf.mxu1 }
0x1930   :  { %v2634_v50 = vadd.f32 %v3225_v57, %v2633_v49 }
0x1931   :  { %v3551_v51 = vpop.f32.mrf.mxu1 }
0x1932   :  { %v2655_v52 = vpack.c.bf16 %v2634_v50, %v2634_v50 }
0x1933   :  { %v2636_v58 = vpop.f32.mrf.mxu1 }
0x1934   :  { %3570 = vmatmul.mubr.bf16.vlgmr.msra.gmra.mxu0 %v2655_v52 }
0x1935   :  { %v3552_v55 = vpop.f32.mrf.mxu1  ;;  %3589 = vmatprep.mubr.msk.bf16.mxu0 %vm4342_vm0, %v4341_v0  ;;  %3586 = vmatpush3.bf16.msra.mxu0 %v3846_v36 }
0x1936   :  { %3587 = vmatprep.subr.bf16.mxu0 %v4341_v0  ;;  %v3253_v0 = vld [vmem:[#allocation31] ss:$0 sm:$0xff] }
0x1939   :  { %3588 = vmatpush3.bf16.msra.mxu0 %v3847_v37 }
0x19f4   :  { %v2745_v54 = vpop.f32.mrf.mxu0 }
0x19f5   :  { %v2746_v56 = vadd.f32 %v3234_v53, %v2745_v54 }
0x19f6   :  { %v3571_v59 = vpop.f32.mrf.mxu0 }
0x19f7   :  { %v2753_v60 = vsel %vm430_vm3, %v2746_v56, 0.0 }
0x19f8   :  { %2754 = vadd.xlane.f32.xlu0 %v2753_v60  ;;  %v2748_v61 = vpop.f32.mrf.mxu0 }
0x19fa   :  { %v3572_v63 = vpop.f32.mrf.mxu0 }
0x1a81   :  { %v2755_v1 = vpop.xlane.xlu0 %2754 }
0x1a82   :  { %v2756_v2 = vmul.f32 0.015625, %v2755_v1 }
0x1a84   :  { %v2757_v4 = vsub.f32 %v2746_v56, %v2756_v2 }
0x1a86   :  { %v2758_v6 = vmul.f32 %v2757_v4, %v2757_v4 }
0x1a88   :  { %v2759_v9 = vsel %vm430_vm3, %v2758_v6, 0.0 }
0x1a89   :  { %2760 = vadd.xlane.f32.xlu1 %v2759_v9 }
0x1b12   :  { %v2761_v13 = vpop.xlane.xlu1 %2760 }
0x1b13   :  { %v2762_v5 = vmul.f32 0.015625, %v2761_v13 }
0x1b15   :  { %v2763_v10 = vadd.f32 1e-05, %v2762_v5 }
0x1b17   :  { %3886 = vrsqrt.f32 %v2763_v10 }
0x1b24   :  { %v3887_v3 = vpop.eup %3886 }
0x1b25   :  { %v2765_v15 = vmul.f32 %v3887_v3, %v2757_v4 }
0x1b27   :  { %v2772_v11 = vmul.f32 %v3243_v14, %v2765_v15 }
0x1b29   :  { %v2779_v17 = vadd.f32 %v3244_v16, %v2772_v11 }
0x1b2b   :  { %v2781_v18 = vmul.f32 0.70710677, %v2779_v17  ;;  %v2780_v20 = vmul.f32 0.5, %v2779_v17 }
0x1b2d   :  { %3888 = verf.f32 %v2781_v18 }
0x1b3a   :  { %v3889_v19 = vpop.eup %3888 }
0x1b3b   :  { %v2783_v21 = vadd.f32 1.0, %v3889_v19 }
0x1b3d   :  { %v2784_v22 = vmul.f32 %v2783_v21, %v2780_v20 }
0x1b3f   :  { %v2793_v23 = vpack.c.bf16 %v2784_v22, %v2784_v22 }
0x1b41   :  { %3582 = vmatmul.mubr.msk.bf16.vlgmr.msra.gmra.mxu1 %vm430_vm3, %v2793_v23 }
0x1c01   :  { %v2862_v24 = vpop.f32.mrf.mxu1 }
0x1c02   :  { %v2863_v25 = vadd.f32 %v3245_v30, %v2862_v24 }
0x1c03   :  { %v3583_v26 = vpop.f32.mrf.mxu1 }
0x1c04   :  { %v2871_v27 = vsel %vm2870_vm4, %v2863_v25, 0.0 }
0x1c05   :  { %2872 = vadd.xlane.f32.xlu0 %v2871_v27  ;;  %v2865_v28 = vpop.f32.mrf.mxu1 }
0x1c07   :  { %v3584_v29 = vpop.f32.mrf.mxu1 }
0x1c8e   :  { %v2873_v31 = vpop.xlane.xlu0 %2872 }
0x1c8f   :  { %v2875_v34 = vmul.f32 0.03125, %v2873_v31 }
0x1c91   :  { %v2876_v32 = vsub.f32 %v2863_v25, %v2875_v34 }
0x1c93   :  { %v2877_v33 = vmul.f32 %v2876_v32, %v2876_v32 }
0x1c95   :  { %v2878_v35 = vsel %vm2870_vm4, %v2877_v33, 0.0 }
0x1c96   :  { %2879 = vadd.xlane.f32.xlu1 %v2878_v35 }
0x1d1f   :  { %v2880_v45 = vpop.xlane.xlu1 %2879 }
0x1d20   :  { %v2881_v38 = vmul.f32 0.03125, %v2880_v45 }
0x1d22   :  { %v2882_v39 = vadd.f32 1e-05, %v2881_v38 }
0x1d24   :  { %3890 = vrsqrt.f32 %v2882_v39 }
0x1d31   :  { %v3891_v46 = vpop.eup %3890 }
0x1d32   :  { %v2884_v41 = vmul.f32 %v3891_v46, %v2876_v32 }
0x1d34   :  { %v2891_v43 = vmul.f32 %v3251_v40, %v2884_v41 }
0x1d36   :  { %v2898_v44 = vadd.f32 %v3252_v42, %v2891_v43 }
0x1d38   :  { %v2900_v47 = vmul.f32 0.70710677, %v2898_v44  ;;  %v2899_v57 = vmul.f32 0.5, %v2898_v44 }
0x1d3a   :  { %3892 = verf.f32 %v2900_v47 }
0x1d47   :  { %v3893_v48 = vpop.eup %3892 }
0x1d48   :  { %v2902_v49 = vadd.f32 1.0, %v3893_v48 }
0x1d4a   :  { %v2903_v50 = vmul.f32 %v2902_v49, %v2899_v57 }
0x1d4c   :  { %v2908_v51 = vpack.c.bf16 %v2903_v50, %v2903_v50 }
0x1d4e   :  { %3590 = vmatmul.mubr.msk.bf16.vlgmr.msra.gmra.mxu0 %vm2870_vm4, %v2908_v51 }
0x1e0e   :  { %v2965_v52 = vpop.f32.mrf.mxu0 }
0x1e0f   :  { %v2966_v58 = vadd.f32 %v3253_v0, %v2965_v52 }
0x1e10   :  { %v3591_v55 = vpop.f32.mrf.mxu0 }
0x1e11   :  { %2972 = vst.msk [vmem:[#allocation32] sm:$0xff] %vm2971_vm5, %v2966_v58 }
0x1e12   :  { %v2968_v53 = vpop.f32.mrf.mxu0 }
0x1e13   :  { %4285 = shalt.err (!%p4282_p1)
}
0x1e14   :  { %2982 = dma.vmem_to_hbm [thread:$0]  %s2980_s29, 128, %s4944_s25, [#allocation4]   ;;  %v3592_v54 = vpop.f32.mrf.mxu0 }
0x1e15   :  { %4314 = dma.done.wait [#allocation4], 128  }
0x1e16   :  { %4315 = vsyncadd [#allocation4], 4294967168 }
0x1e17   :  { %2986 = vsyncpa [#allocation3], 1 }
0x1e18   :  { %2987 = vsyncpa [#allocation6], 1 }
0x1e19   :  { %2988 = vsyncpa [#allocation9], 1 }
0x1e1a   :  { %2989 = vsyncpa [#allocation12], 1 }
0x1e1b   :  { %2990 = vsyncpa [#allocation15], 1 }
0x1e1c   :  { %2991 = vsyncpa [#allocation18], 1 }
0x1e1d   :  { %2992 = vsyncpa [#allocation21], 1 }
0x1e1e   :  { %2993 = vsyncpa [#allocation24], 1 }
0x1e1f   :  { %2994 = vsyncpa [#allocation27], 1 }
0x1e20   :  { %2995 = vsyncpa [#allocation30], 1 }
0x1e21   :  { %2996 = vsyncpa [#allocation4], 1 }

</bundles_post_ra>
